<compile_context>
chip_gen: v5e
topology: v5e:2x2
jax: 0.10.0
libtpu: 0.0.40
codegen_flags: <defaults>
</compile_context>

<pallas_src>
from functools import partial

import jax
import jax.numpy as jnp
from jax import lax
from jax.experimental import pallas as pl
from jax.experimental.pallas import tpu as pltpu


def _round_up(x, m):
    return (x + m - 1) // m * m


def textcnn_kernel(tok_ref, table_ref, convw_ref, convb_ref, vlen_ref,
                   fcw_ref, fcb_ref, out_ref, *, kernel_sizes):
    """One batch tile of the full TextCNN forward.

    tok_ref   : (TB, L, 1)     int32   token ids for this batch tile
    table_ref : (V, E)         float32 embedding table (resident across grid)
    convw_ref : (Kmax*E, Cp)   bf16    fused, zero-padded conv weights
    convb_ref : (1, Cp)        float32 fused conv bias
    vlen_ref  : (1, Cp)        int32   per-channel valid conv length L - K + 1
    fcw_ref   : (Cp, Np)       bf16    zero-padded FC weight
    fcb_ref   : (1, Np)        float32 zero-padded FC bias
    out_ref   : (TB, Np)       float32 padded logits
    """
    K_min = min(kernel_sizes)
    K_max = max(kernel_sizes)

    TB, L, _ = tok_ref.shape
    V, E = table_ref.shape
    C_pad = convb_ref.shape[1]
    T_max = L - K_min + 1            # longest valid conv output among branches
    L_pad = L + (K_max - K_min)      # rows a K_max-tap window may touch

    # ---- fused embedding gather (exact one-hot matmul on the MXU) ----------
    # TODO(synk): replace with a scalar-prefetch DMA gather for large vocab.
    tok = tok_ref[...]                                       # (TB, L, 1) int32
    vocab_iota = lax.broadcasted_iota(jnp.int32, (TB, L, V), 2)
    onehot = (tok == vocab_iota).astype(jnp.float32)         # (TB, L, V)
    emb = jnp.einsum('blv,ve->ble', onehot, table_ref[...],
                     preferred_element_type=jnp.float32)     # (TB, L, E) f32

    # Zero-pad time so every K_max-tap window stays in range.
    pad = jnp.zeros((TB, L_pad - L, E), jnp.float32)
    emb_pad = jnp.concatenate([emb, pad], axis=1)            # (TB, L_pad, E)

    # ---- im2col: one lane-dense MXU matmul covering all branches -----------
    # windows[:, t, k*E:(k+1)*E] = emb_pad[:, t + k, :]  (static shifts; the
    # small sublane relayout is negligible next to the fused 160x128 matmul).
    windows = jnp.concatenate(
        [emb_pad[:, k:k + T_max, :] for k in range(K_max)], axis=-1)
    windows = windows.astype(jnp.bfloat16)                   # (TB, T_max, Kmax*E)

    z = jnp.einsum('btk,kc->btc', windows, convw_ref[...],
                   preferred_element_type=jnp.float32)       # (TB, T_max, Cp)
    z = jnp.maximum(z + convb_ref[...], 0.0)                 # bias + ReLU

    # Mask time positions beyond each branch's valid length.  ReLU output is
    # >= 0, so 0 is neutral for the max over the (guaranteed non-empty) valid
    # positions; padded channels reduce to 0 and hit zero FC rows anyway.
    pos = lax.broadcasted_iota(jnp.int32, (1, T_max, C_pad), 1)
    valid = pos < vlen_ref[...][:, None, :]                  # (1, T_max, Cp)
    pooled = jnp.max(jnp.where(valid, z, 0.0), axis=1)       # (TB, Cp)

    # ---- FC (dropout = identity in eval mode) -------------------------------
    logits = jnp.dot(pooled.astype(jnp.bfloat16), fcw_ref[...],
                     preferred_element_type=jnp.float32) + fcb_ref[...]
    out_ref[...] = logits.astype(out_ref.dtype)              # (TB, Np)


def textcnn_forward(tokens, emb_table, conv_ws, conv_bs, fc_w, fc_b,
                    *, kernel_sizes, num_kernels, num_classes, batch_tile=8):
    """TextCNN forward.  Parameters are in PyTorch layout:
       conv_ws[i]: (C, 1, K_i, E), conv_bs[i]: (C,), fc_w: (num_classes, n*C),
       fc_b: (num_classes,), emb_table: (V, E), tokens: (B, L) int."""
    B, L = tokens.shape
    V, E = emb_table.shape
    C = num_kernels
    n = len(kernel_sizes)
    K_max = max(kernel_sizes)

    # Lane-dense padded channel / class dims.  128 already saturates the v5e
    # MXU and is a full vreg width on every generation; don't over-pad to 256.
    C_pad = _round_up(n * C, 128)
    N_pad = _round_up(num_classes, 128)

    # ---- pack per-branch params into one fused, zero-padded layout ---------
    w_fused = jnp.zeros((K_max * E, C_pad), jnp.float32)
    b_fused = jnp.zeros((1, C_pad), jnp.float32)
    vlen = jnp.zeros((1, C_pad), jnp.int32)
    for i, (K, w, b) in enumerate(zip(kernel_sizes, conv_ws, conv_bs)):
        # torch Conv2d weight (C, 1, K, E) -> (K, E, C) -> (K*E, C)
        w_kec = jnp.transpose(w[:, 0], (1, 2, 0)).reshape(K * E, C)
        w_fused = w_fused.at[:K * E, i * C:(i + 1) * C].set(w_kec)
        b_fused = b_fused.at[0, i * C:(i + 1) * C].set(b)
        vlen = vlen.at[0, i * C:(i + 1) * C].set(L - K + 1)

    fcw_pad = jnp.zeros((C_pad, N_pad), jnp.float32)
    fcw_pad = fcw_pad.at[:n * C, :num_classes].set(fc_w.T)
    fcb_pad = jnp.zeros((1, N_pad), jnp.float32)
    fcb_pad = fcb_pad.at[0, :num_classes].set(fc_b)

    # bf16 matmul operands (f32 accumulation happens inside the kernel).
    w_fused = w_fused.astype(jnp.bfloat16)
    fcw_pad = fcw_pad.astype(jnp.bfloat16)

    TB = min(batch_tile, B)
    assert B % TB == 0, "batch must be divisible by the batch tile"
    tok3 = tokens.astype(jnp.int32)[:, :, None]              # (B, L, 1)

    # NOTE(v7x): with 64 MiB VMEM, size TB so 2x(TB, L, E) double buffers plus
    # weights stay well under the scoped limit (trivial at these shapes).
    logits_pad = pl.pallas_call(
        partial(textcnn_kernel, kernel_sizes=tuple(kernel_sizes)),
        out_shape=jax.ShapeDtypeStruct((B, N_pad), jnp.float32),
        grid=(B // TB,),
        in_specs=[
            pl.BlockSpec((TB, L, 1), lambda i: (i, 0, 0)),        # tokens
            pl.BlockSpec((V, E), lambda i: (0, 0)),               # emb table
            pl.BlockSpec((K_max * E, C_pad), lambda i: (0, 0)),   # fused conv w
            pl.BlockSpec((1, C_pad), lambda i: (0, 0)),           # fused conv b
            pl.BlockSpec((1, C_pad), lambda i: (0, 0)),           # valid lengths
            pl.BlockSpec((C_pad, N_pad), lambda i: (0, 0)),       # fc w
            pl.BlockSpec((1, N_pad), lambda i: (0, 0)),           # fc b
        ],
        out_specs=pl.BlockSpec((TB, N_pad), lambda i: (i, 0)),
        compiler_params=pltpu.CompilerParams(
            dimension_semantics=("parallel",)),   # v7x megacore over batch tiles
    )(tok3, emb_table.astype(jnp.float32), w_fused, b_fused, vlen,
      fcw_pad, fcb_pad)

    return logits_pad[:, :num_classes]


def reference_forward(tokens, emb_table, conv_ws, conv_bs, fc_w, fc_b,
                      *, kernel_sizes):
    """Pure-JAX f32 reference implementing the PyTorch module math (eval)."""
    emb = emb_table[tokens]                                  # (B, L, E)
    B, L, E = emb.shape
    pooled = []
    for K, w, b in zip(kernel_sizes, conv_ws, conv_bs):
        T = L - K + 1
        C = w.shape[0]
        w_kec = jnp.transpose(w[:, 0], (1, 2, 0))            # (K, E, C)
        acc = jnp.zeros((B, T, C), jnp.float32)
        for k in range(K):
            acc = acc + jnp.einsum('ble,ec->blc', emb[:, k:k + T, :], w_kec[k])
        acc = jnp.maximum(acc + b, 0.0)
        pooled.append(jnp.max(acc, axis=1))                  # (B, C)
    feat = jnp.concatenate(pooled, axis=1)
    return feat @ fc_w.T + fc_b


if __name__ == "__main__":
    vocab_size = 50
    embedding_size = 32
    num_classes = 4
    kernel_sizes = (3, 4, 5)
    num_kernels = 8
    B, L = 16, 16        # small, but enough for a 2-step batch grid (TB = 8)

    key = jax.random.PRNGKey(0)
    keys = jax.random.split(key, 2 + 2 * len(kernel_sizes) + 2)

    tokens = jax.random.randint(keys[0], (B, L), 0, vocab_size, dtype=jnp.int32)
    emb_table = 0.1 * jax.random.normal(
        keys[1], (vocab_size, embedding_size), jnp.float32)

    conv_ws, conv_bs = [], []
    for i, K in enumerate(kernel_sizes):
        conv_ws.append(0.1 * jax.random.normal(
            keys[2 + 2 * i], (num_kernels, 1, K, embedding_size), jnp.float32))
        conv_bs.append(0.1 * jax.random.normal(
            keys[3 + 2 * i], (num_kernels,), jnp.float32))

    fc_w = 0.1 * jax.random.normal(
        keys[-2], (num_classes, len(kernel_sizes) * num_kernels), jnp.float32)
    fc_b = 0.1 * jax.random.normal(keys[-1], (num_classes,), jnp.float32)

    logits = textcnn_forward(tokens, emb_table, conv_ws, conv_bs, fc_w, fc_b,
                             kernel_sizes=kernel_sizes,
                             num_kernels=num_kernels,
                             num_classes=num_classes,
                             batch_tile=8)
    logits = jax.block_until_ready(logits)

    ref = reference_forward(tokens, emb_table, conv_ws, conv_bs, fc_w, fc_b,
                            kernel_sizes=kernel_sizes)
    assert logits.shape == (B, num_classes)
    max_err = jnp.max(jnp.abs(logits - ref))
    # bf16 matmul operands with f32 accumulation -> ~1e-3-level error here.
    assert jnp.allclose(logits, ref, atol=2e-2, rtol=2e-2), (
        f"mismatch vs reference (max abs err {max_err})")
    print("KERNEL_OK")
</pallas_src>

<mosaic_0001>
module attributes {stable_mosaic.version = 11 : i64} {
  func.func @textcnn_kernel(%arg0: i32, %arg1: memref<8x16x1xi32, #tpu.memory_space<vmem>>, %arg2: memref<50x32xf32, #tpu.memory_space<vmem>>, %arg3: memref<160x128xbf16, #tpu.memory_space<vmem>>, %arg4: memref<1x128xf32, #tpu.memory_space<vmem>>, %arg5: memref<1x128xi32, #tpu.memory_space<vmem>>, %arg6: memref<128x128xbf16, #tpu.memory_space<vmem>>, %arg7: memref<1x128xf32, #tpu.memory_space<vmem>>, %arg8: memref<8x128xf32, #tpu.memory_space<vmem>>) attributes {dimension_semantics = [#tpu.dimension_semantics<parallel>], iteration_bounds = array<i64: 2>, scalar_prefetch = 0 : i64, scratch_operands = 0 : i64, tpu.core_type = #tpu.core_type<tc>, window_params = [{transform_indices = @transform_0, window_bounds = array<i64: 8, 16, 1>}, {pipeline_mode = #tpu.pipeline_mode<synchronous>, transform_indices = @transform_1, window_bounds = array<i64: 50, 32>}, {pipeline_mode = #tpu.pipeline_mode<synchronous>, transform_indices = @transform_2, window_bounds = array<i64: 160, 128>}, {pipeline_mode = #tpu.pipeline_mode<synchronous>, transform_indices = @transform_3, window_bounds = array<i64: 1, 128>}, {pipeline_mode = #tpu.pipeline_mode<synchronous>, transform_indices = @transform_4, window_bounds = array<i64: 1, 128>}, {pipeline_mode = #tpu.pipeline_mode<synchronous>, transform_indices = @transform_5, window_bounds = array<i64: 128, 128>}, {pipeline_mode = #tpu.pipeline_mode<synchronous>, transform_indices = @transform_6, window_bounds = array<i64: 1, 128>}, {transform_indices = @transform_7, window_bounds = array<i64: 8, 128>}]} {
    %c0 = arith.constant 0 : index
    %c0_0 = arith.constant 0 : index
    %c0_1 = arith.constant 0 : index
    %0 = vector.load %arg1[%c0, %c0_0, %c0_1] : memref<8x16x1xi32, #tpu.memory_space<vmem>>, vector<8x16x1xi32>
    %1 = tpu.iota {dimensions = array<i32: 2>} : vector<8x16x50xi32>
    %2 = vector.broadcast %0 : vector<8x16x1xi32> to vector<8x16x50xi32>
    %3 = arith.cmpi eq, %2, %1 : vector<8x16x50xi32>
    %4 = arith.extui %3 : vector<8x16x50xi1> to vector<8x16x50xi32>
    %5 = arith.sitofp %4 : vector<8x16x50xi32> to vector<8x16x50xf32>
    %c0_2 = arith.constant 0 : index
    %c0_3 = arith.constant 0 : index
    %6 = vector.load %arg2[%c0_2, %c0_3] : memref<50x32xf32, #tpu.memory_space<vmem>>, vector<50x32xf32>
    "tpu.trace_start"() <{level = 10 : i32, message = "blv,ve->ble"}> : () -> ()
    %cst = arith.constant dense<0.000000e+00> : vector<8x16x32xf32>
    %7 = tpu.matmul %5, %6, %cst {dimension_numbers = #tpu.dot_dimension_numbers<[2], [0], [0, 1], [1], [0, 0, 0, 1, 1, 1], [], []>} : vector<8x16x50xf32>, vector<50x32xf32>, vector<8x16x32xf32> -> vector<8x16x32xf32>
    %cst_4 = arith.constant 0.000000e+00 : f32
    "tpu.trace_stop"() : () -> ()
    %8 = vector.broadcast %cst_4 : f32 to vector<8x2x32xf32>
    %9 = tpu.concatenate %7, %8 in 1 : vector<8x16x32xf32>, vector<8x2x32xf32> -> vector<8x18x32xf32>
    %10 = vector.extract_strided_slice %9 {offsets = [0, 0, 0], sizes = [8, 14, 32], strides = [1, 1, 1]} : vector<8x18x32xf32> to vector<8x14x32xf32>
    %11 = vector.extract_strided_slice %9 {offsets = [0, 1, 0], sizes = [8, 14, 32], strides = [1, 1, 1]} : vector<8x18x32xf32> to vector<8x14x32xf32>
    %12 = vector.extract_strided_slice %9 {offsets = [0, 2, 0], sizes = [8, 14, 32], strides = [1, 1, 1]} : vector<8x18x32xf32> to vector<8x14x32xf32>
    %13 = vector.extract_strided_slice %9 {offsets = [0, 3, 0], sizes = [8, 14, 32], strides = [1, 1, 1]} : vector<8x18x32xf32> to vector<8x14x32xf32>
    %14 = vector.extract_strided_slice %9 {offsets = [0, 4, 0], sizes = [8, 14, 32], strides = [1, 1, 1]} : vector<8x18x32xf32> to vector<8x14x32xf32>
    %15 = tpu.concatenate %10, %11, %12, %13, %14 in 2 : vector<8x14x32xf32>, vector<8x14x32xf32>, vector<8x14x32xf32>, vector<8x14x32xf32>, vector<8x14x32xf32> -> vector<8x14x160xf32>
    %16 = arith.truncf %15 : vector<8x14x160xf32> to vector<8x14x160xbf16>
    %c0_5 = arith.constant 0 : index
    %c0_6 = arith.constant 0 : index
    %17 = vector.load %arg3[%c0_5, %c0_6] : memref<160x128xbf16, #tpu.memory_space<vmem>>, vector<160x128xbf16>
    "tpu.trace_start"() <{level = 10 : i32, message = "btk,kc->btc"}> : () -> ()
    %cst_7 = arith.constant dense<0.000000e+00> : vector<8x14x128xf32>
    %18 = tpu.matmul %16, %17, %cst_7 {dimension_numbers = #tpu.dot_dimension_numbers<[2], [0], [0, 1], [1], [0, 0, 0, 1, 1, 1], [], []>} : vector<8x14x160xbf16>, vector<160x128xbf16>, vector<8x14x128xf32> -> vector<8x14x128xf32>
    "tpu.trace_stop"() : () -> ()
    %c0_8 = arith.constant 0 : index
    %c0_9 = arith.constant 0 : index
    %19 = vector.load %arg4[%c0_8, %c0_9] : memref<1x128xf32, #tpu.memory_space<vmem>>, vector<1x128xf32>
    %20 = vector.shape_cast %19 : vector<1x128xf32> to vector<1x1x128xf32>
    %21 = vector.broadcast %20 : vector<1x1x128xf32> to vector<8x14x128xf32>
    %22 = arith.addf %18, %21 : vector<8x14x128xf32>
    %cst_10 = arith.constant 0.000000e+00 : f32
    %23 = vector.broadcast %cst_10 : f32 to vector<8x14x128xf32>
    %24 = arith.maximumf %22, %23 : vector<8x14x128xf32>
    %25 = tpu.iota {dimensions = array<i32: 1>} : vector<1x14x128xi32>
    %c0_11 = arith.constant 0 : index
    %c0_12 = arith.constant 0 : index
    %26 = vector.load %arg5[%c0_11, %c0_12] : memref<1x128xi32, #tpu.memory_space<vmem>>, vector<1x128xi32>
    %27 = vector.shape_cast %26 : vector<1x128xi32> to vector<1x1x128xi32>
    %28 = vector.broadcast %27 : vector<1x1x128xi32> to vector<1x14x128xi32>
    %29 = arith.cmpi slt, %25, %28 : vector<1x14x128xi32>
    %cst_13 = arith.constant 0.000000e+00 : f32
    %30 = vector.shape_cast %29 : vector<1x14x128xi1> to vector<1x14x128xi1>
    %31 = vector.broadcast %30 : vector<1x14x128xi1> to vector<8x14x128xi1>
    %32 = vector.broadcast %cst_13 : f32 to vector<8x14x128xf32>
    %33 = arith.select %31, %24, %32 : vector<8x14x128xi1>, vector<8x14x128xf32>
    %cst_14 = arith.constant dense<0xFF800000> : vector<8x128xf32>
    %34 = vector.multi_reduction <maximumf>, %33, %cst_14 [1] : vector<8x14x128xf32> to vector<8x128xf32>
    %35 = arith.truncf %34 : vector<8x128xf32> to vector<8x128xbf16>
    %c0_15 = arith.constant 0 : index
    %c0_16 = arith.constant 0 : index
    %36 = vector.load %arg6[%c0_15, %c0_16] : memref<128x128xbf16, #tpu.memory_space<vmem>>, vector<128x128xbf16>
    %cst_17 = arith.constant dense<0.000000e+00> : vector<8x128xf32>
    %37 = tpu.matmul %35, %36, %cst_17 {dimension_numbers = #tpu.dot_dimension_numbers<[1], [0], [0], [1], [0, 0, 1, 1], [], []>} : vector<8x128xbf16>, vector<128x128xbf16>, vector<8x128xf32> -> vector<8x128xf32>
    %c0_18 = arith.constant 0 : index
    %c0_19 = arith.constant 0 : index
    %38 = vector.load %arg7[%c0_18, %c0_19] : memref<1x128xf32, #tpu.memory_space<vmem>>, vector<1x128xf32>
    %39 = vector.broadcast %38 : vector<1x128xf32> to vector<8x128xf32>
    %40 = arith.addf %37, %39 : vector<8x128xf32>
    %c0_20 = arith.constant 0 : index
    %c0_21 = arith.constant 0 : index
    %41 = vector.load %arg8[%c0_20, %c0_21] : memref<8x128xf32, #tpu.memory_space<vmem>>, vector<8x128xf32>
    tpu.vector_store %arg8[%c0_20, %c0_21], %40 {strides = array<i32>} : memref<8x128xf32, #tpu.memory_space<vmem>>, vector<8x128xf32>,
    return
  }
  func.func @transform_0(%arg0: i32) -> (i32, i32, i32) {
    %c0_i32 = arith.constant 0 : i32
    %c0_i32_0 = arith.constant 0 : i32
    %c0_i32_1 = arith.constant 0 : i32
    return %arg0, %c0_i32, %c0_i32_0 : i32, i32, i32
  }
  func.func @transform_1(%arg0: i32) -> (i32, i32) {
    %c0_i32 = arith.constant 0 : i32
    %c0_i32_0 = arith.constant 0 : i32
    %c0_i32_1 = arith.constant 0 : i32
    return %c0_i32, %c0_i32_0 : i32, i32
  }
  func.func @transform_2(%arg0: i32) -> (i32, i32) {
    %c0_i32 = arith.constant 0 : i32
    %c0_i32_0 = arith.constant 0 : i32
    %c0_i32_1 = arith.constant 0 : i32
    return %c0_i32, %c0_i32_0 : i32, i32
  }
  func.func @transform_3(%arg0: i32) -> (i32, i32) {
    %c0_i32 = arith.constant 0 : i32
    %c0_i32_0 = arith.constant 0 : i32
    %c0_i32_1 = arith.constant 0 : i32
    return %c0_i32, %c0_i32_0 : i32, i32
  }
  func.func @transform_4(%arg0: i32) -> (i32, i32) {
    %c0_i32 = arith.constant 0 : i32
    %c0_i32_0 = arith.constant 0 : i32
    %c0_i32_1 = arith.constant 0 : i32
    return %c0_i32, %c0_i32_0 : i32, i32
  }
  func.func @transform_5(%arg0: i32) -> (i32, i32) {
    %c0_i32 = arith.constant 0 : i32
    %c0_i32_0 = arith.constant 0 : i32
    %c0_i32_1 = arith.constant 0 : i32
    return %c0_i32, %c0_i32_0 : i32, i32
  }
  func.func @transform_6(%arg0: i32) -> (i32, i32) {
    %c0_i32 = arith.constant 0 : i32
    %c0_i32_0 = arith.constant 0 : i32
    %c0_i32_1 = arith.constant 0 : i32
    return %c0_i32, %c0_i32_0 : i32, i32
  }
  func.func @transform_7(%arg0: i32) -> (i32, i32) {
    %c0_i32 = arith.constant 0 : i32
    %c0_i32_0 = arith.constant 0 : i32
    return %arg0, %c0_i32 : i32, i32
  }
}

</mosaic_0001>

<bundles_post_ra>
// kernel: tpu_custom_call.1
= control target key start
LH: loop header
LB: loop body
LE: loop exit
PB: predicated region body
PF: predicated region fallthrough
CT: control target
= control target key end

     0   :  { %12 = vsyncpa [#allocation3], 0  ;;  %s3312_s0 = inlined_call_operand.vmem [shape: s32[16,16,1], index: 0, kind: input, shape index: {}]   ;;  %s3313_s1 = inlined_call_operand.vmem [shape: f32[50,32], index: 1, kind: input, shape index: {}]   ;;  %s3314_s2 = inlined_call_operand.vmem [shape: bf16[160,128], index: 2, kind: input, shape index: {}]   ;;  %s3315_s3 = inlined_call_operand.vmem [shape: f32[1,128], index: 3, kind: input, shape index: {}]   ;;  %s3316_s4 = inlined_call_operand.vmem [shape: s32[1,128], index: 4, kind: input, shape index: {}]   ;;  %s3317_s5 = inlined_call_operand.vmem [shape: bf16[128,128], index: 5, kind: input, shape index: {}]   ;;  %s3318_s6 = inlined_call_operand.vmem [shape: f32[1,128], index: 6, kind: input, shape index: {}]   ;;  %s3319_s7 = inlined_call_operand.hbm [shape: f32[16,128], index: 7, kind: output, shape index: {}]  }
   0x1   :  { %14 = vsyncpa [#allocation3 + $0x1], 0  ;;  %s2497_s24 = smov 0   ;;  %s2499_s25 = smov 0  }
   0x2   :  { %s2501_s26 = smov 0   ;;  %s2503_s27 = smov 0  }
   0x3 LB: > { %s2079_s28 = sadd.s32 4294967295, %s2450_s27   ;;  %s2080_s29 = sadd.s32 4294967294, %s2450_s27   ;;  %s2450_s27 = sphi %s2503_s27, %s3329_s27   ;;  %s2446_s26 = sphi %s2501_s26, %s3328_s26   ;;  %s2442_s25 = sphi %s2499_s25, %s3327_s25   ;;  %s2438_s24 = sphi %s2497_s24, %s3326_s24  }
   0x4   : > { %s2520_s30 = sadd.s32 1, %s2450_s27   ;;  %s179_s8 = sadd.s32 1, %s2446_s26 }
   0x5   : > { %s176_s9 = ssub.s32 %s2450_s27, %s2520_s30  ;;  %p189_p0 = scmp.ne.s32.totalorder %s2446_s26, %s2442_s25 }
   0x6   : > { %p177_p1 = scmp.eq.s32.totalorder %s176_s9, 0  ;;  %p190_p2 = scmp.eq.s32.totalorder %s2079_s28, 1 }
   0x7   : > { %p195_p3 = scmp.ne.s32.totalorder %s2442_s25, %s2438_s24  ;;  %p196_p4 = scmp.eq.s32.totalorder %s2080_s29, 1 }
   0x8   : > { %s2530_s10 = scalar_select %p177_p1, %s2446_s26, %s179_s8  }
   0x9   : > { %p2532_p5 = por %p190_p2, %p189_p0  ;;  %p2536_p6 = por %p196_p4, %p195_p3 }
   0xa   : > { %p2083_p7 = scmp.ge.s32.totalorder %s2450_s27, 1  ;;  %p242_p8 = scmp.lt.s32.totalorder %s2450_s27, 3 }
   0xc   : > { %p243_p9 = pnand %p2083_p7, %p242_p8 }
   0xd   : > { %s2542_s13 = sshll.u32 (!%p243_p9), %s2079_s28, 3  ;;  %s2455_s20 = smov (!%p243_p9), 32  }
   0xe   : > { %246 = sbr.rel (%p243_p9) target bundleno = 862 (0x35e), region = 48  ;;  %p276_p10 = scmp.lt.s32.totalorder (!%p243_p9), %s2542_s13, 15 }
   0xf   : > { %s2456_s21 = smov (!%p243_p9), 96   ;;  %s2016_s28 = scalar_lea.hbm (!%p243_p9), %s3319_s7, %s2542_s13 }
  0x13   : > { %v2452_v0 = vmov 0   ;;  %s277_s14 = scalar_select %p276_p10, %s2542_s13, 15  ;;  %vm453_vm0 = vcmask 1041408   ;;  %v403_v7 = vld [vmem:[%s3313_s1 + $0x30] sm:$0x3]  ;;  %v402_v8 = vld [vmem:[%s3313_s1 + $0x28] sm:$0xff]  ;;  %v299_v24 = vlaneseq }
  0x14   : > { %2268 = vset.pattern.permute.xlu1 %v2452_v0  ;;  %2267 = vset.pattern.permute.xlu0 %v2452_v0  ;;  %v401_v9 = vld [vmem:[%s3313_s1 + $0x20] sm:$0xff]  ;;  %v400_v12 = vld [vmem:[%s3313_s1 + $0x18] sm:$0xff]  ;;  %v399_v14 = vld [vmem:[%s3313_s1 + $0x10] sm:$0xff]  ;;  %vm404_vm1 = vcmask 408576   ;;  %v2453_v27 = vmov 0.0  }
  0x15   : > { %2269 = vset.pattern.permute.xlu2 %v2452_v0  ;;  %s2204_s15 = sshll.u32 %s277_s14, 4  ;;  %2104 = vmatpush.msk.msra.mxu0 %vm453_vm0, %v403_v7  ;;  %v398_v15 = vld [vmem:[%s3313_s1 + $0x8] sm:$0xff]  ;;  %v397_v23 = vld [vmem:[%s3313_s1] sm:$0xff]  ;;  %v2589_v25 = vand.u32 127, %v299_v24 }
  0x16   : > { %s2549_s18 = scalar_lea.vmem %s3312_s0, %s2204_s15  ;;  %s2020_s15 = sshll.u32 %s2016_s28, 4  ;;  %s2021_s15 = int_to_ptr.hbm [resolvable:$true] %s2020_s15 }
  0x17   : > { %v285_v1 = vld [vmem:[%s2549_s18 + $0x10] sm:$0xff]  ;;  %v283_v2 = vld [vmem:[%s2549_s18] sm:$0xff]  ;;  %v286_v4 = vld [vmem:[%s2549_s18 + $0x18] sm:$0xff]  ;;  %467 = vmatpush.msra.mxu0 %v402_v8  ;;  %s2402_s17 = sshra.s32 %s2021_s15, 4  ;;  %s2403_s17 = int_to_ptr.hbm [resolvable:$true] %s2402_s17 }
  0x18   : > { %308 = vperm.xlu1 %2268, %v285_v1   ;;  %302 = vperm.xlu0 %2267, %v283_v2   ;;  %v287_v3 = vld [vmem:[%s2549_s18 + $0x20] sm:$0xff]  ;;  %v284_v5 = vld [vmem:[%s2549_s18 + $0x8] sm:$0xff]  ;;  %v290_v10 = vld [vmem:[%s2549_s18 + $0x38] sm:$0xff]  ;;  %s2404_s19 = scalar_lea.hbm %s2403_s17, 8  ;;  %p2409_p0 = scmp.lt.s32.totalorder %s2403_s17, %s3319_s7 }
  0x19   : > { %314 = vperm.xlu2 %2269, %v287_v3   ;;  %v288_v6 = vld [vmem:[%s2549_s18 + $0x28] sm:$0xff]  ;;  %v289_v11 = vld [vmem:[%s2549_s18 + $0x30] sm:$0xff]  ;;  %468 = vmatpush.msra.mxu0 %v401_v9  ;;  %v291_v13 = vld [vmem:[%s2549_s18 + $0x40] sm:$0xff]  ;;  %p2405_p11 = scmp.ne.s32.totalorder %s2403_s17, %s2404_s19 }
  0x1a   : > { %v293_v16 = vld [vmem:[%s2549_s18 + $0x50] sm:$0xff]  ;;  %v292_v17 = vld [vmem:[%s2549_s18 + $0x48] sm:$0xff]  ;;  %v294_v18 = vld [vmem:[%s2549_s18 + $0x58] sm:$0xff] }
  0x1b   : > { %469 = vmatpush.msra.mxu0 %v400_v12  ;;  %v296_v19 = vld [vmem:[%s2549_s18 + $0x68] sm:$0xff]  ;;  %v295_v20 = vld [vmem:[%s2549_s18 + $0x60] sm:$0xff]  ;;  %v297_v21 = vld [vmem:[%s2549_s18 + $0x70] sm:$0xff]  ;;  %p2406_p12 = pnand %p2405_p11, %p2532_p5 }
  0x1c   : > { %v298_v22 = vld [vmem:[%s2549_s18 + $0x78] sm:$0xff]  ;;  %s2454_s18 = smov 64  }
  0x1d   : > { %470 = vmatpush.msra.mxu0 %v399_v14  ;;  %p2407_p13 = pneg %p2406_p12 }
  0x1f   : > { %471 = vmatpush.msra.mxu0 %v398_v15 }
  0x20   : > { %311 = vperm.xlu1 %2268, %v286_v4   ;;  %305 = vperm.xlu0 %2267, %v284_v5  }
  0x21   : > { %317 = vperm.xlu2 %2269, %v288_v6   ;;  %472 = vmatpush.msra.mxu0 %v397_v23  ;;  %v2651_v6 = vrot.slane %v2453_v27, 3 }
  0x28   : > { %323 = vperm.xlu1 %2268, %v290_v10   ;;  %320 = vperm.xlu0 %2267, %v289_v11  }
  0x29   : > { %326 = vperm.xlu2 %2269, %v291_v13  }
  0x30   : > { %332 = vperm.xlu1 %2268, %v293_v16   ;;  %329 = vperm.xlu0 %2267, %v292_v17  }
  0x31   : > { %335 = vperm.xlu2 %2269, %v294_v18  }
  0x38   : > { %341 = vperm.xlu1 %2268, %v296_v19   ;;  %338 = vperm.xlu0 %2267, %v295_v20  }
  0x39   : > { %344 = vperm.xlu2 %2269, %v297_v21  }
  0x40   : > { %347 = vperm.xlu0 %2267, %v298_v22  }
  0x73   : > { %v315_v35 = vpop.permute.xlu2 %314 }
  0x74   : > { %vm353_vm6 = vcmp.eq.s32.totalorder %v315_v35, %v2589_v25 }
  0x75   : > { %v2092_v36 = vsel %vm353_vm6, 1.0, %v2453_v27  ;;  %vm834_vm6 = vcmask 523264  }
  0x7b   : > { %v318_v37 = vpop.permute.xlu2 %317 }
  0x7c   : > { %vm354_vm7 = vcmp.eq.s32.totalorder %v318_v37, %v2589_v25 }
  0x7d   : > { %v2093_v38 = vsel %vm354_vm7, 1.0, %v2453_v27  ;;  %vm767_vm7 = vcmask 1043456  }
  0x83   : > { %v327_v43 = vpop.permute.xlu2 %326 }
  0x84   : > { %vm357_vm10 = vcmp.eq.s32.totalorder %v327_v43, %v2589_v25 }
  0x85   : > { %v2096_v44 = vsel %vm357_vm10, 1.0, %v2453_v27  ;;  %vm943_vm10 = vcmask 1041409  }
  0x8a   : > { %v303_v26 = vpop.permute.xlu0 %302  ;;  %v309_v31 = vpop.permute.xlu1 %308 }
  0x8b   : > { %vm349_vm2 = vcmp.eq.s32.totalorder %v303_v26, %v2589_v25  ;;  %vm351_vm4 = vcmp.eq.s32.totalorder %v309_v31, %v2589_v25  ;;  %v336_v49 = vpop.permute.xlu2 %335 }
  0x8c   : > { %v2088_v28 = vsel %vm349_vm2, 1.0, %v2453_v27  ;;  %v2090_v32 = vsel %vm351_vm4, 1.0, %v2453_v27  ;;  %vm360_vm13 = vcmp.eq.s32.totalorder %v336_v49, %v2589_v25  ;;  %vm538_vm4 = vcmask 1046528  }
  0x8d   : > { %2105 = vmatmul.msk.f32.vlgmr.msra.gmra.mxu0 %vm404_vm1, %v2088_v28  ;;  %v2099_v50 = vsel %vm360_vm13, 1.0, %v2453_v27 }
  0x92   : > { %v306_v29 = vpop.permute.xlu0 %305  ;;  %v312_v33 = vpop.permute.xlu1 %311 }
  0x93   : > { %vm350_vm3 = vcmp.eq.s32.totalorder %v306_v29, %v2589_v25  ;;  %vm352_vm5 = vcmp.eq.s32.totalorder %v312_v33, %v2589_v25  ;;  %v345_v55 = vpop.permute.xlu2 %344 }
  0x94   : > { %v2089_v30 = vsel %vm350_vm3, 1.0, %v2453_v27  ;;  %v2091_v34 = vsel %vm352_vm5, 1.0, %v2453_v27  ;;  %vm363_vm0 = vcmp.eq.s32.totalorder %v345_v55, %v2589_v25  ;;  %vm611_vm3 = vcmask 1045504  }
  0x95   : > { %2106 = vmatmul.msk.f32.gmra.mxu0 %vm404_vm1, %v2089_v30  ;;  %v2102_v56 = vsel %vm363_vm0, 1.0, %v2453_v27  ;;  %vm817_vm5 = vcmask 261120   ;;  %vm1935_vm0 = vcmask 1045509  }
  0x9a   : > { %v321_v39 = vpop.permute.xlu0 %320  ;;  %v324_v41 = vpop.permute.xlu1 %323 }
  0x9b   : > { %vm355_vm8 = vcmp.eq.s32.totalorder %v321_v39, %v2589_v25  ;;  %vm356_vm9 = vcmp.eq.s32.totalorder %v324_v41, %v2589_v25 }
  0x9c   : > { %v2094_v40 = vsel %vm355_vm8, 1.0, %v2453_v27  ;;  %v2095_v42 = vsel %vm356_vm9, 1.0, %v2453_v27  ;;  %vm851_vm8 = vcmask 785408   ;;  %vm939_vm9 = vcmask 1040384  }
  0x9d   : > { %2107 = vmatmul.msk.f32.gmra.mxu0 %vm404_vm1, %v2090_v32 }
  0xa2   : > { %v330_v45 = vpop.permute.xlu0 %329  ;;  %v333_v47 = vpop.permute.xlu1 %332 }
  0xa3   : > { %vm358_vm11 = vcmp.eq.s32.totalorder %v330_v45, %v2589_v25  ;;  %vm359_vm12 = vcmp.eq.s32.totalorder %v333_v47, %v2589_v25 }
  0xa4   : > { %v2097_v46 = vsel %vm358_vm11, 1.0, %v2453_v27  ;;  %v2098_v48 = vsel %vm359_vm12, 1.0, %v2453_v27  ;;  %vm947_vm11 = vcmask 1042434   ;;  %vm951_vm12 = vcmask 1043459  }
  0xa5   : > { %2108 = vmatmul.msk.f32.gmra.mxu0 %vm404_vm1, %v2091_v34 }
  0xaa   : > { %v339_v51 = vpop.permute.xlu0 %338  ;;  %v342_v53 = vpop.permute.xlu1 %341 }
  0xab   : > { %vm361_vm14 = vcmp.eq.s32.totalorder %v339_v51, %v2589_v25  ;;  %vm362_vm15 = vcmp.eq.s32.totalorder %v342_v53, %v2589_v25 }
  0xac   : > { %v2100_v52 = vsel %vm361_vm14, 1.0, %v2453_v27  ;;  %v2101_v54 = vsel %vm362_vm15, 1.0, %v2453_v27  ;;  %vm1933_vm15 = vcmask 1044484  }
  0xad   : > { %2109 = vmatmul.msk.f32.gmra.mxu0 %vm404_vm1, %v2092_v36 }
  0xb2   : > { %v348_v57 = vpop.permute.xlu0 %347 }
  0xb3   : > { %vm364_vm2 = vcmp.eq.s32.totalorder %v348_v57, %v2589_v25 }
  0xb4   : > { %v2103_v58 = vsel %vm364_vm2, 1.0, %v2453_v27  ;;  %vm1937_vm2 = vcmask 1046534  }
  0xb5   : > { %2110 = vmatmul.msk.f32.gmra.mxu0 %vm404_vm1, %v2093_v38 }
  0xbd   : > { %2111 = vmatmul.msk.f32.gmra.mxu0 %vm404_vm1, %v2094_v40 }
  0xc5   : > { %2112 = vmatmul.msk.f32.gmra.mxu0 %vm404_vm1, %v2095_v42 }
  0xcd   : > { %2113 = vmatmul.msk.f32.gmra.mxu0 %vm404_vm1, %v2096_v44 }
  0xd5   : > { %2114 = vmatmul.msk.f32.gmra.mxu0 %vm404_vm1, %v2097_v46 }
  0xdd   : > { %2115 = vmatmul.msk.f32.gmra.mxu0 %vm404_vm1, %v2098_v48 }
  0xe5   : > { %2116 = vmatmul.msk.f32.gmra.mxu0 %vm404_vm1, %v2099_v50 }
  0xed   : > { %2117 = vmatmul.msk.f32.gmra.mxu0 %vm404_vm1, %v2100_v52 }
  0xf5   : > { %2118 = vmatmul.msk.f32.gmra.mxu0 %vm404_vm1, %v2101_v54 }
  0xfd   : > { %2119 = vmatmul.msk.f32.gmra.mxu0 %vm404_vm1, %v2102_v56 }
 0x105   : > { %2120 = vmatmul.msk.f32.gmra.mxu0 %vm404_vm1, %v2103_v58  ;;  %vm685_vm1 = vcmask 1044480  }
 0x10a   : > { %v2639_v59 = vpop.f32.mrf.mxu0 }
 0x10b   : > { %v539_v61 = vrot.slane %v2639_v59, 1  ;;  %v612_v62 = vrot.slane %v2639_v59, 2  ;;  %v686_v7 = vrot.slane %v2639_v59, 3 }
 0x112   : > { %v2641_v60 = vpop.f32.mrf.mxu0 }
 0x113   : > { %v613_v63 = vrot.slane %v2641_v60, 2  ;;  %v540_v0 = vrot.slane %v2641_v60, 1  ;;  %v687_v5 = vrot.slane %v2641_v60, 3 }
 0x115   : > { %v614_v1 = vsel %vm611_vm3, %v612_v62, %v613_v63  ;;  %v541_v2 = vsel %vm538_vm4, %v539_v61, %v540_v0  ;;  %v688_v9 = vsel %vm685_vm1, %v686_v7, %v687_v5  ;;  %v690_v10 = vsel %vm685_vm1, %v687_v5, %v2651_v6 }
 0x116   : > { %v2275_v3 = vpack.i.bf16 %v613_v63, %v614_v1  ;;  %v2270_v4 = vpack.i.bf16 %v540_v0, %v541_v2  ;;  %v2280_v11 = vpack.i.bf16 %v690_v10, %v688_v9 }
 0x118   : > { %2276 = vrot.lane.b32.xlu2 %v2275_v3, %s2454_s18  ;;  %2271 = vrot.lane.b32.xlu1 %v2270_v4, %s2455_s20 }
 0x11a   : > { %v2656_v8 = vpop.f32.mrf.mxu0 }
 0x11b   : > { %v542_v13 = vrot.slane %v2656_v8, 1  ;;  %v615_v14 = vrot.slane %v2656_v8, 2  ;;  %v691_v22 = vrot.slane %v2656_v8, 3 }
 0x120   : > { %2281 = vrot.lane.b32.xlu1 %v2280_v11, %s2456_s21 }
 0x122   : > { %v2662_v12 = vpop.f32.mrf.mxu0 }
 0x123   : > { %v616_v15 = vrot.slane %v2662_v12, 2  ;;  %v543_v16 = vrot.slane %v2662_v12, 1  ;;  %v692_v21 = vrot.slane %v2662_v12, 3 }
 0x125   : > { %v617_v17 = vsel %vm611_vm3, %v615_v14, %v616_v15  ;;  %v544_v18 = vsel %vm538_vm4, %v542_v13, %v543_v16  ;;  %v693_v25 = vsel %vm685_vm1, %v691_v22, %v692_v21  ;;  %v694_v26 = vsel %vm685_vm1, %v692_v21, %v2651_v6 }
 0x126   : > { %v2290_v19 = vpack.i.bf16 %v616_v15, %v617_v17  ;;  %v2285_v20 = vpack.i.bf16 %v543_v16, %v544_v18  ;;  %v2295_v28 = vpack.i.bf16 %v694_v26, %v693_v25 }
 0x128   : > { %2291 = vrot.lane.b32.xlu2 %v2290_v19, %s2454_s18  ;;  %2286 = vrot.lane.b32.xlu0 %v2285_v20, %s2455_s20 }
 0x12a   : > { %v2674_v23 = vpop.f32.mrf.mxu0 }
 0x12b   : > { %v545_v29 = vrot.slane %v2674_v23, 1  ;;  %v618_v30 = vrot.slane %v2674_v23, 2  ;;  %v695_v32 = vrot.slane %v2674_v23, 3 }
 0x130   : > { %2296 = vrot.lane.b32.xlu0 %v2295_v28, %s2456_s21 }
 0x132   : > { %v2682_v31 = vpop.f32.mrf.mxu0 }
 0x133   : > { %v696_v33 = vrot.slane %v2682_v31, 3  ;;  %v619_v34 = vrot.slane %v2682_v31, 2  ;;  %v546_v35 = vrot.slane %v2682_v31, 1 }
 0x135   : > { %v697_v36 = vsel %vm685_vm1, %v695_v32, %v696_v33  ;;  %v698_v37 = vsel %vm685_vm1, %v696_v33, %v2651_v6  ;;  %v620_v38 = vsel %vm611_vm3, %v618_v30, %v619_v34  ;;  %v547_v39 = vsel %vm538_vm4, %v545_v29, %v546_v35 }
 0x136   : > { %v2310_v40 = vpack.i.bf16 %v698_v37, %v697_v36  ;;  %v2305_v41 = vpack.i.bf16 %v619_v34, %v620_v38  ;;  %v2300_v42 = vpack.i.bf16 %v546_v35, %v547_v39 }
 0x138   : > { %2311 = vrot.lane.b32.xlu0 %v2310_v40, %s2456_s21  ;;  %2306 = vrot.lane.b32.xlu2 %v2305_v41, %s2454_s18 }
 0x139   : > { %2301 = vrot.lane.b32.xlu1 %v2300_v42, %s2455_s20 }
 0x13a   : > { %v2696_v43 = vpop.f32.mrf.mxu0 }
 0x13b   : > { %v548_v44 = vrot.slane %v2696_v43, 1  ;;  %v621_v45 = vrot.slane %v2696_v43, 2  ;;  %v699_v47 = vrot.slane %v2696_v43, 3 }
 0x142   : > { %v2700_v46 = vpop.f32.mrf.mxu0 }
 0x143   : > { %v700_v48 = vrot.slane %v2700_v46, 3  ;;  %v622_v49 = vrot.slane %v2700_v46, 2  ;;  %v549_v50 = vrot.slane %v2700_v46, 1 }
 0x145   : > { %v701_v51 = vsel %vm685_vm1, %v699_v47, %v700_v48  ;;  %v702_v52 = vsel %vm685_vm1, %v700_v48, %v2651_v6  ;;  %v623_v53 = vsel %vm611_vm3, %v621_v45, %v622_v49  ;;  %v550_v54 = vsel %vm538_vm4, %v548_v44, %v549_v50  ;;  %v2212_v47 = vld [vmem:[%s3314_s2 + $0x38] sm:$0xff] }
 0x146   : > { %v2325_v55 = vpack.i.bf16 %v702_v52, %v701_v51  ;;  %v2320_v56 = vpack.i.bf16 %v622_v49, %v623_v53  ;;  %v2315_v57 = vpack.i.bf16 %v549_v50, %v550_v54  ;;  %1403 = vmatpush.bf16.msra.mxu1 %v2212_v47  ;;  %v2211_v51 = vld [vmem:[%s3314_s2 + $0x30] sm:$0xff]  ;;  %v2210_v52 = vld [vmem:[%s3314_s2 + $0x28] sm:$0xff]  ;;  %v2209_v53 = vld [vmem:[%s3314_s2 + $0x20] sm:$0xff] }
 0x148   : > { %2326 = vrot.lane.b32.xlu0 %v2325_v55, %s2456_s21  ;;  %2321 = vrot.lane.b32.xlu2 %v2320_v56, %s2454_s18 }
 0x149   : > { %2316 = vrot.lane.b32.xlu1 %v2315_v57, %s2455_s20 }
 0x14a   : > { %v2714_v58 = vpop.f32.mrf.mxu0  ;;  %1404 = vmatpush.bf16.msra.mxu1 %v2211_v51 }
 0x14b   : > { %v551_v61 = vrot.slane %v2714_v58, 1  ;;  %v624_v62 = vrot.slane %v2714_v58, 2  ;;  %v703_v0 = vrot.slane %v2714_v58, 3 }
 0x14e   : > { %1405 = vmatpush.bf16.msra.mxu1 %v2210_v52 }
 0x152   : > { %v2718_v63 = vpop.f32.mrf.mxu0  ;;  %1406 = vmatpush.bf16.msra.mxu1 %v2209_v53 }
 0x153   : > { %v704_v1 = vrot.slane %v2718_v63, 3  ;;  %v625_v2 = vrot.slane %v2718_v63, 2  ;;  %v552_v3 = vrot.slane %v2718_v63, 1 }
 0x155   : > { %v705_v4 = vsel %vm685_vm1, %v703_v0, %v704_v1  ;;  %v626_v5 = vsel %vm611_vm3, %v624_v62, %v625_v2  ;;  %v553_v7 = vsel %vm538_vm4, %v551_v61, %v552_v3  ;;  %v706_v20 = vsel %vm685_vm1, %v704_v1, %v2651_v6 }
 0x156   : > { %735 = vrot.lane.b32.xlu0 %v705_v4, %s2456_s21  ;;  %v2335_v9 = vpack.i.bf16 %v625_v2, %v626_v5  ;;  %v2330_v10 = vpack.i.bf16 %v552_v3, %v553_v7 }
 0x158   : > { %2336 = vrot.lane.b32.xlu2 %v2335_v9, %s2454_s18  ;;  %2331 = vrot.lane.b32.xlu1 %v2330_v10, %s2455_s20  ;;  %v2208_v10 = vld [vmem:[%s3314_s2 + $0x18] sm:$0xff] }
 0x159   : > { %1407 = vmatpush.bf16.msra.mxu1 %v2208_v10 }
 0x15a   : > { %v2730_v11 = vpop.f32.mrf.mxu0 }
 0x15b   : > { %v554_v13 = vrot.slane %v2730_v11, 1  ;;  %v627_v14 = vrot.slane %v2730_v11, 2  ;;  %v707_v16 = vrot.slane %v2730_v11, 3 }
 0x162   : > { %v2734_v15 = vpop.f32.mrf.mxu0 }
 0x163   : > { %v708_v17 = vrot.slane %v2734_v15, 3  ;;  %v628_v18 = vrot.slane %v2734_v15, 2  ;;  %v555_v19 = vrot.slane %v2734_v15, 1 }
 0x165   : > { %v709_v21 = vsel %vm685_vm1, %v707_v16, %v708_v17  ;;  %v629_v22 = vsel %vm611_vm3, %v627_v14, %v628_v18  ;;  %v556_v25 = vsel %vm538_vm4, %v554_v13, %v555_v19  ;;  %v710_v32 = vsel %vm685_vm1, %v708_v17, %v2651_v6  ;;  %v2207_v14 = vld [vmem:[%s3314_s2 + $0x10] sm:$0xff] }
 0x166   : > { %v2350_v26 = vpack.i.bf16 %v709_v21, %v706_v20  ;;  %v2345_v28 = vpack.i.bf16 %v628_v18, %v629_v22  ;;  %v2340_v29 = vpack.i.bf16 %v555_v19, %v556_v25  ;;  %1408 = vmatpush.bf16.msra.mxu1 %v2207_v14  ;;  %v2806_v18 = vrot.slane %v2453_v27, 4  ;;  %v2206_v22 = vld [vmem:[%s3314_s2 + $0x8] sm:$0xff] }
 0x167   : > { %v769_v19 = vrot.slane %v2641_v60, 4  ;;  %v2214_v25 = vld [vmem:[%s3314_s2 + $0x48] sm:$0xff] }
 0x168   : > { %2351 = vrot.lane.b32.xlu0 %v2350_v26, %s2456_s21  ;;  %2346 = vrot.lane.b32.xlu2 %v2345_v28, %s2454_s18 }
 0x169   : > { %2341 = vrot.lane.b32.xlu1 %v2340_v29, %s2455_s20  ;;  %v768_v29 = vrot.slane %v2639_v59, 4  ;;  %1453 = vmatpush.bf16.msra.mxu2 %v2214_v25 }
 0x16a   : > { %v2748_v30 = vpop.f32.mrf.mxu0  ;;  %1409 = vmatpush.bf16.msra.mxu1 %v2206_v22 }
 0x16b   : > { %v711_v34 = vrot.slane %v2748_v30, 3  ;;  %v557_v36 = vrot.slane %v2748_v30, 1  ;;  %v630_v37 = vrot.slane %v2748_v30, 2 }
 0x171   : > { %741 = vrot.lane.b32.xlu1 %v710_v32, %s2456_s21 }
 0x172   : > { %v2753_v33 = vpop.f32.mrf.mxu0  ;;  %v2277_v17 = vpop.permute.xlu2 %2276 }
 0x173   : > { %v712_v35 = vrot.slane %v2753_v33, 3  ;;  %v631_v38 = vrot.slane %v2753_v33, 2  ;;  %v558_v39 = vrot.slane %v2753_v33, 1  ;;  %v2279_v26 = vunpack.i.h.bf16 %v2277_v17 }
 0x174   : > { %v2278_v27 = vunpack.i.l.bf16 %v2277_v17 }
 0x175   : > { %v713_v40 = vsel %vm685_vm1, %v711_v34, %v712_v35  ;;  %v714_v41 = vsel %vm685_vm1, %v712_v35, %v2651_v6  ;;  %v632_v44 = vsel %vm611_vm3, %v630_v37, %v631_v38  ;;  %v559_v45 = vsel %vm538_vm4, %v557_v36, %v558_v39 }
 0x176   : > { %v2365_v42 = vpack.i.bf16 %v714_v41, %v713_v40  ;;  %v2360_v48 = vpack.i.bf16 %v631_v38, %v632_v44  ;;  %v2355_v49 = vpack.i.bf16 %v558_v39, %v559_v45  ;;  %v770_v36 = vsel %vm767_vm7, %v768_v29, %v769_v19  ;;  %v2213_v40 = vld [vmem:[%s3314_s2 + $0x40] sm:$0xff] }
 0x177   : > { %v772_v37 = vsel %vm767_vm7, %v769_v19, %v2806_v18  ;;  %1454 = vmatpush.bf16.msra.mxu2 %v2213_v40 }
 0x178   : > { %2361 = vrot.lane.b32.xlu0 %v2360_v48, %s2454_s18  ;;  %2356 = vrot.lane.b32.xlu2 %v2355_v49, %s2455_s20 }
 0x179   : > { %2366 = vrot.lane.b32.xlu1 %v2365_v42, %s2456_s21 }
 0x17a   : > { %v2772_v50 = vpop.f32.mrf.mxu0 }
 0x17b   : > { %v560_v55 = vrot.slane %v2772_v50, 1  ;;  %v633_v56 = vrot.slane %v2772_v50, 2  ;;  %v715_v62 = vrot.slane %v2772_v50, 3 }
 0x182   : > { %v2783_v54 = vpop.f32.mrf.mxu0 }
 0x183   : > { %v561_v57 = vrot.slane %v2783_v54, 1  ;;  %v634_v61 = vrot.slane %v2783_v54, 2  ;;  %v716_v0 = vrot.slane %v2783_v54, 3 }
 0x185   : > { %v635_v1 = vsel %vm611_vm3, %v633_v56, %v634_v61  ;;  %v562_v2 = vsel %vm538_vm4, %v560_v55, %v561_v57  ;;  %v717_v3 = vsel %vm685_vm1, %v715_v62, %v716_v0  ;;  %v718_v4 = vsel %vm685_vm1, %v716_v0, %v2651_v6 }
 0x186   : > { %v2375_v5 = vpack.i.bf16 %v634_v61, %v635_v1  ;;  %v2370_v7 = vpack.i.bf16 %v561_v57, %v562_v2  ;;  %v2380_v9 = vpack.i.bf16 %v718_v4, %v717_v3  ;;  %v2292_v3 = vpop.permute.xlu2 %2291 }
 0x187   : > { %v2294_v17 = vunpack.i.h.bf16 %v2292_v3 }
 0x188   : > { %2376 = vrot.lane.b32.xlu0 %v2375_v5, %s2454_s18  ;;  %2371 = vrot.lane.b32.xlu2 %v2370_v7, %s2455_s20  ;;  %v774_v5 = vrot.slane %v2662_v12, 4  ;;  %s272_s18 = sand.u32 1, %s2442_s25  }
 0x189   : > { %2381 = vrot.lane.b32.xlu1 %v2380_v9, %s2456_s21  ;;  %v2293_v9 = vunpack.i.l.bf16 %v2292_v3  ;;  %s2084_s20 = sshll.u32 %s272_s18, 3  ;;  %s2006_s16 = scalar_lea.sflag [#allocation3], %s272_s18 }
 0x18a   : > { %v2272_v13 = vpop.permute.xlu1 %2271  ;;  %s274_s9 = scalar_lea.vmem [#allocation2], %s2084_s20  ;;  %s2408_s21 = scalar_lea.hbm %s3319_s7, 16 }
 0x18b   : > { %v2274_v6 = vunpack.i.h.bf16 %v2272_v13  ;;  %v2273_v16 = vunpack.i.l.bf16 %v2272_v13  ;;  %v773_v13 = vrot.slane %v2656_v8, 4  ;;  %s2018_s14 = sshll.u32 %s274_s9, 4  ;;  %p2410_p1 = scmp.lt.s32.totalorder %s2408_s21, %s2404_s19  ;;  %s2019_s14 = int_to_ptr.vmem [resolvable:$true] %s2018_s14 }
 0x18d   : > { %v819_v20 = vsel %vm817_vm5, %v2641_v60, %v2274_v6  ;;  %v818_v21 = vsel %vm817_vm5, %v2639_v59, %v2273_v16  ;;  %v2205_v59 = vld [vmem:[%s3314_s2] sm:$0xff]  ;;  %p2411_p2 = por %p2410_p1, %p2409_p0 }
 0x18e   : > { %v835_v34 = vsel %vm834_vm6, %v818_v21, %v2278_v27  ;;  %v836_v35 = vsel %vm834_vm6, %v819_v20, %v2279_v26  ;;  %1410 = vmatpush.bf16.msra.mxu1 %v2205_v59  ;;  %v775_v20 = vsel %vm767_vm7, %v773_v13, %v774_v5 }
 0x18f   : > { %p2412_p3 = pnand %p2411_p2, %p2407_p13 }
 0x192   : > { %v2282_v28 = vpop.permute.xlu1 %2281 }
 0x193   : > { %v2284_v60 = vunpack.i.h.bf16 %v2282_v28  ;;  %v2283_v32 = vunpack.i.l.bf16 %v2282_v28  ;;  %v2307_v28 = vpop.permute.xlu2 %2306 }
 0x195   : > { %v852_v38 = vsel %vm851_vm8, %v835_v34, %v2283_v32  ;;  %v853_v39 = vsel %vm851_vm8, %v836_v35, %v2284_v60  ;;  %v778_v34 = vrot.slane %v2682_v31, 4 }
 0x196   : > { %v868_v41 = vpack.c.bf16 %v770_v36, %v852_v38  ;;  %v869_v42 = vpack.c.bf16 %v772_v37, %v853_v39  ;;  %v777_v37 = vrot.slane %v2674_v23, 4  ;;  %v2308_v38 = vunpack.i.l.bf16 %v2307_v28 }
 0x198   : > { %v923_v44 = vrot.slane %v868_v41, 3  ;;  %v924_v45 = vrot.slane %v869_v42, 3 }
 0x19a   : > { %v942_v47 = vsel %vm939_vm9, %v868_v41, %v923_v44  ;;  %v944_v48 = vsel %vm943_vm10, %v868_v41, %v923_v44  ;;  %v948_v49 = vsel %vm947_vm11, %v868_v41, %v923_v44  ;;  %v952_v51 = vsel %vm951_vm12, %v868_v41, %v923_v44  ;;  %v2287_v52 = vpop.permute.xlu0 %2286 }
 0x19b   : > { %v946_v53 = vrot.slane %v944_v48, 1  ;;  %v950_v55 = vrot.slane %v948_v49, 2  ;;  %v954_v56 = vrot.slane %v952_v51, 3  ;;  %v957_v57 = vsel %vm939_vm9, %v869_v42, %v924_v45  ;;  %1114 = vst [vmem:[#allocation1] ss:$9 sm:$0xff] %v942_v47 }
 0x19c   : > { %v958_v61 = vsel %vm943_vm10, %v869_v42, %v924_v45  ;;  %v961_v62 = vsel %vm947_vm11, %v869_v42, %v924_v45  ;;  %1125 = vst [vmem:[#allocation1 + $0x4] ss:$9 sm:$0xff] %v957_v57  ;;  %v2288_v2 = vunpack.i.l.bf16 %v2287_v52  ;;  %v2289_v4 = vunpack.i.h.bf16 %v2287_v52 }
 0x19d   : > { %v960_v0 = vrot.slane %v958_v61, 1  ;;  %v963_v1 = vrot.slane %v961_v62, 2  ;;  %1117 = vst [vmem:[#allocation1 + $0x1] ss:$9 sm:$0xff] %v946_v53  ;;  %v2309_v47 = vunpack.i.h.bf16 %v2307_v28  ;;  %v779_v49 = vsel %vm767_vm7, %v777_v37, %v778_v34 }
 0x19e   : > { %1120 = vst [vmem:[#allocation1 + $0x2] ss:$9 sm:$0xff] %v950_v55  ;;  %v820_v7 = vsel %vm817_vm5, %v2656_v8, %v2288_v2  ;;  %v821_v14 = vsel %vm817_vm5, %v2662_v12, %v2289_v4  ;;  %v776_v8 = vsel %vm767_vm7, %v774_v5, %v2806_v18 }
 0x19f   : > { %1123 = vst [vmem:[#allocation1 + $0x3] ss:$9 sm:$0xff] %v954_v56  ;;  %v837_v19 = vsel %vm834_vm6, %v820_v7, %v2293_v9  ;;  %v838_v22 = vsel %vm834_vm6, %v821_v14, %v2294_v17 }
 0x1a0   : > { %1128 = vst [vmem:[#allocation1 + $0x5] ss:$9 sm:$0xff] %v960_v0 }
 0x1a1   : > { %1131 = vst [vmem:[#allocation1 + $0x6] ss:$9 sm:$0xff] %v963_v1 }
 0x1a2   : > { %v2297_v10 = vpop.permute.xlu0 %2296 }
 0x1a3   : > { %v2299_v6 = vunpack.i.h.bf16 %v2297_v10  ;;  %v2298_v16 = vunpack.i.l.bf16 %v2297_v10  ;;  %v780_v10 = vsel %vm767_vm7, %v778_v34, %v2806_v18 }
 0x1a5   : > { %v854_v21 = vsel %vm851_vm8, %v837_v19, %v2298_v16  ;;  %v855_v26 = vsel %vm851_vm8, %v838_v22, %v2299_v6  ;;  %v2322_v6 = vpop.permute.xlu2 %2321  ;;  %v782_v19 = vrot.slane %v2700_v46, 4 }
 0x1a6   : > { %v870_v25 = vpack.c.bf16 %v775_v20, %v854_v21  ;;  %v871_v12 = vpack.c.bf16 %v776_v8, %v855_v26  ;;  %v2323_v26 = vunpack.i.l.bf16 %v2322_v6 }
 0x1a8   : > { %v925_v27 = vrot.slane %v870_v25, 3  ;;  %v926_v39 = vrot.slane %v871_v12, 3 }
 0x1aa   : > { %v966_v29 = vsel %vm939_vm9, %v870_v25, %v925_v27  ;;  %v2312_v32 = vpop.permute.xlu0 %2311  ;;  %v967_v59 = vsel %vm943_vm10, %v870_v25, %v925_v27  ;;  %v970_v42 = vsel %vm947_vm11, %v870_v25, %v925_v27  ;;  %v973_v48 = vsel %vm951_vm12, %v870_v25, %v925_v27 }
 0x1ab   : > { %1133 = vst [vmem:[#allocation1 + $0x7] ss:$9 sm:$0xff] %v966_v29  ;;  %v2302_v60 = vpop.permute.xlu1 %2301  ;;  %v2313_v41 = vunpack.i.l.bf16 %v2312_v32  ;;  %v969_v52 = vrot.slane %v967_v59, 1  ;;  %v972_v55 = vrot.slane %v970_v42, 2  ;;  %v975_v62 = vrot.slane %v973_v48, 3 }
 0x1ac   : > { %v2304_v35 = vunpack.i.h.bf16 %v2302_v60  ;;  %v2303_v36 = vunpack.i.l.bf16 %v2302_v60  ;;  %v2314_v0 = vunpack.i.h.bf16 %v2312_v32  ;;  %v978_v2 = vsel %vm939_vm9, %v871_v12, %v926_v39 }
 0x1ad   : > { %v781_v25 = vrot.slane %v2696_v43, 4  ;;  %v2324_v60 = vunpack.i.h.bf16 %v2322_v6 }
 0x1ae   : > { %v822_v40 = vsel %vm817_vm5, %v2674_v23, %v2303_v36  ;;  %v823_v44 = vsel %vm817_vm5, %v2682_v31, %v2304_v35  ;;  %v979_v23 = vsel %vm943_vm10, %v871_v12, %v926_v39  ;;  %v982_v31 = vsel %vm947_vm11, %v871_v12, %v926_v39 }
 0x1af   : > { %v839_v45 = vsel %vm834_vm6, %v822_v40, %v2308_v38  ;;  %v840_v61 = vsel %vm834_vm6, %v823_v44, %v2309_v47  ;;  %v981_v3 = vrot.slane %v979_v23, 1  ;;  %v984_v5 = vrot.slane %v982_v31, 2 }
 0x1b0   : > { %v856_v51 = vsel %vm851_vm8, %v839_v45, %v2313_v41  ;;  %v857_v4 = vsel %vm851_vm8, %v840_v61, %v2314_v0  ;;  %v783_v36 = vsel %vm767_vm7, %v781_v25, %v782_v19 }
 0x1b1   : > { %v872_v53 = vpack.c.bf16 %v779_v49, %v856_v51  ;;  %v873_v14 = vpack.c.bf16 %v780_v10, %v857_v4  ;;  %v784_v51 = vsel %vm767_vm7, %v782_v19, %v2806_v18 }
 0x1b2   : > { %v1134_v56 = vld [vmem:[#allocation1] sm:$0xff]  ;;  %v1135_v57 = vld [vmem:[#allocation1 + $0x9] sm:$0xff] }
 0x1b3   : > { %1137 = vst [vmem:[#allocation1] ss:$9 sm:$0xff] %v969_v52  ;;  %v927_v1 = vrot.slane %v872_v53, 3  ;;  %1411 = vmatmul.bf16.vlgmr.msra.gmra.mxu1 %v1134_v56  ;;  %2161 = vmatmul.msk.bf16.vlgmr.msra.gmra.mxu2 %vm817_vm5, %v1135_v57  ;;  %v928_v20 = vrot.slane %v873_v14, 3  ;;  %v2337_v57 = vpop.permute.xlu2 %2336 }
 0x1b4   : > { %1139 = vst [vmem:[#allocation1 + $0x1] ss:$9 sm:$0xff] %v972_v55 }
 0x1b5   : > { %1141 = vst [vmem:[#allocation1 + $0x2] ss:$9 sm:$0xff] %v975_v62  ;;  %v987_v7 = vsel %vm939_vm9, %v872_v53, %v927_v1  ;;  %v988_v9 = vsel %vm943_vm10, %v872_v53, %v927_v1  ;;  %v991_v27 = vsel %vm947_vm11, %v872_v53, %v927_v1  ;;  %v994_v8 = vsel %vm951_vm12, %v872_v53, %v927_v1 }
 0x1b6   : > { %1142 = vst [vmem:[#allocation1 + $0x3] ss:$9 sm:$0xff] %v978_v2  ;;  %v990_v13 = vrot.slane %v988_v9, 1  ;;  %v1000_v34 = vsel %vm943_vm10, %v873_v14, %v928_v20  ;;  %v993_v35 = vrot.slane %v991_v27, 2  ;;  %v1003_v38 = vsel %vm947_vm11, %v873_v14, %v928_v20 }
 0x1b7   : > { %1144 = vst [vmem:[#allocation1 + $0x4] ss:$9 sm:$0xff] %v981_v3  ;;  %v996_v39 = vrot.slane %v994_v8, 3  ;;  %v999_v42 = vsel %vm939_vm9, %v873_v14, %v928_v20  ;;  %v1002_v44 = vrot.slane %v1000_v34, 1  ;;  %v1005_v47 = vrot.slane %v1003_v38, 2 }
 0x1b8   : > { %1146 = vst [vmem:[#allocation1 + $0x5] ss:$9 sm:$0xff] %v984_v5  ;;  %v786_v62 = vrot.slane %v2718_v63, 4  ;;  %v2338_v1 = vunpack.i.l.bf16 %v2337_v57  ;;  %v785_v2 = vrot.slane %v2714_v58, 4  ;;  %v2339_v34 = vunpack.i.h.bf16 %v2337_v57 }
 0x1b9   : > { %1147 = vst [vmem:[#allocation1 + $0x6] ss:$9 sm:$0xff] %v987_v7 }
 0x1ba   : > { %1149 = vst [vmem:[#allocation1 + $0x7] ss:$9 sm:$0xff] %v990_v13  ;;  %v2327_v17 = vpop.permute.xlu0 %2326  ;;  %v787_v10 = vsel %vm767_vm7, %v785_v2, %v786_v62 }
 0x1bb   : > { %v2317_v16 = vpop.permute.xlu1 %2316  ;;  %v2328_v29 = vunpack.i.l.bf16 %v2327_v17 }
 0x1bc   : > { %v2319_v21 = vunpack.i.h.bf16 %v2317_v16  ;;  %v2318_v22 = vunpack.i.l.bf16 %v2317_v16 }
 0x1be   : > { %v825_v28 = vsel %vm817_vm5, %v2700_v46, %v2319_v21  ;;  %v824_v12 = vsel %vm817_vm5, %v2696_v43, %v2318_v22  ;;  %v2329_v43 = vunpack.i.h.bf16 %v2327_v17 }
 0x1bf   : > { %v841_v32 = vsel %vm834_vm6, %v824_v12, %v2323_v26  ;;  %v842_v46 = vsel %vm834_vm6, %v825_v28, %v2324_v60 }
 0x1c0   : > { %v858_v37 = vsel %vm851_vm8, %v841_v32, %v2328_v29  ;;  %v859_v48 = vsel %vm851_vm8, %v842_v46, %v2329_v43  ;;  %v788_v43 = vsel %vm767_vm7, %v786_v62, %v2806_v18 }
 0x1c1   : > { %v1150_v59 = vld [vmem:[#allocation1] sm:$0xff]  ;;  %v1151_v40 = vld [vmem:[#allocation1 + $0x9] sm:$0xff]  ;;  %v874_v41 = vpack.c.bf16 %v783_v36, %v858_v37  ;;  %v875_v55 = vpack.c.bf16 %v784_v51, %v859_v48 }
 0x1c2   : > { %1153 = vst [vmem:[#allocation1] ss:$9 sm:$0xff] %v993_v35  ;;  %v2347_v35 = vpop.permute.xlu2 %2346 }
 0x1c3   : > { %1155 = vst [vmem:[#allocation1 + $0x1] ss:$9 sm:$0xff] %v996_v39  ;;  %v929_v45 = vrot.slane %v874_v41, 3  ;;  %1416 = vmatmul.bf16.gmra.mxu1 %v1150_v59  ;;  %2162 = vmatmul.msk.bf16.gmra.mxu2 %vm817_vm5, %v1151_v40  ;;  %v930_v31 = vrot.slane %v875_v55, 3  ;;  %v790_v39 = vrot.slane %v2734_v15, 4 }
 0x1c4   : > { %1156 = vst [vmem:[#allocation1 + $0x2] ss:$9 sm:$0xff] %v999_v42 }
 0x1c5   : > { %1158 = vst [vmem:[#allocation1 + $0x3] ss:$9 sm:$0xff] %v1002_v44  ;;  %v1008_v49 = vsel %vm939_vm9, %v874_v41, %v929_v45  ;;  %v1009_v52 = vsel %vm943_vm10, %v874_v41, %v929_v45  ;;  %v1012_v53 = vsel %vm947_vm11, %v874_v41, %v929_v45  ;;  %v1015_v3 = vsel %vm951_vm12, %v874_v41, %v929_v45 }
 0x1c6   : > { %1160 = vst [vmem:[#allocation1 + $0x4] ss:$9 sm:$0xff] %v1005_v47  ;;  %v1011_v23 = vrot.slane %v1009_v52, 1  ;;  %v1014_v56 = vrot.slane %v1012_v53, 2  ;;  %v1021_v9 = vsel %vm943_vm10, %v875_v55, %v930_v31  ;;  %v1024_v14 = vsel %vm947_vm11, %v875_v55, %v930_v31 }
 0x1c7   : > { %1161 = vst [vmem:[#allocation1 + $0x5] ss:$9 sm:$0xff] %v1008_v49  ;;  %v1017_v6 = vrot.slane %v1015_v3, 3  ;;  %v1020_v20 = vsel %vm939_vm9, %v875_v55, %v930_v31  ;;  %v1023_v21 = vrot.slane %v1021_v9, 1  ;;  %v1026_v22 = vrot.slane %v1024_v14, 2 }
 0x1c8   : > { %1163 = vst [vmem:[#allocation1 + $0x6] ss:$9 sm:$0xff] %v1011_v23  ;;  %v736_v5 = vpop.permute.xlu0 %735  ;;  %v2348_v41 = vunpack.i.l.bf16 %v2347_v35  ;;  %v2349_v55 = vunpack.i.h.bf16 %v2347_v35 }
 0x1c9   : > { %1165 = vst [vmem:[#allocation1 + $0x7] ss:$9 sm:$0xff] %v1014_v56 }
 0x1ca   : > { %v2332_v61 = vpop.permute.xlu1 %2331 }
 0x1cb   : > { %v2333_v0 = vunpack.i.l.bf16 %v2332_v61  ;;  %v2334_v28 = vunpack.i.h.bf16 %v2332_v61 }
 0x1cd   : > { %v826_v4 = vsel %vm817_vm5, %v2714_v58, %v2333_v0  ;;  %v827_v32 = vsel %vm817_vm5, %v2718_v63, %v2334_v28  ;;  %v789_v63 = vrot.slane %v2730_v11, 4 }
 0x1ce   : > { %v843_v7 = vsel %vm834_vm6, %v826_v4, %v2338_v1  ;;  %v844_v46 = vsel %vm834_vm6, %v827_v32, %v2339_v34 }
 0x1cf   : > { %v860_v13 = vsel %vm851_vm8, %v843_v7, %v736_v5  ;;  %v791_v49 = vsel %vm767_vm7, %v789_v63, %v790_v39 }
 0x1d0   : > { %v876_v16 = vpack.c.bf16 %v787_v10, %v860_v13  ;;  %v1166_v17 = vld [vmem:[#allocation1] sm:$0xff]  ;;  %v1167_v19 = vld [vmem:[#allocation1 + $0x9] sm:$0xff] }
 0x1d1   : > { %1169 = vst [vmem:[#allocation1] ss:$9 sm:$0xff] %v1017_v6 }
 0x1d2   : > { %v931_v58 = vrot.slane %v876_v16, 3  ;;  %1170 = vst [vmem:[#allocation1 + $0x1] ss:$9 sm:$0xff] %v1020_v20  ;;  %v2357_v13 = vpop.permute.xlu2 %2356 }
 0x1d3   : > { %1421 = vmatmul.bf16.gmra.mxu1 %v1166_v17  ;;  %2163 = vmatmul.msk.bf16.gmra.mxu2 %vm817_vm5, %v1167_v19  ;;  %1172 = vst [vmem:[#allocation1 + $0x2] ss:$9 sm:$0xff] %v1023_v21  ;;  %v2359_v20 = vunpack.i.h.bf16 %v2357_v13  ;;  %v2358_v21 = vunpack.i.l.bf16 %v2357_v13 }
 0x1d4   : > { %v1029_v25 = vsel %vm939_vm9, %v876_v16, %v931_v58  ;;  %v1030_v26 = vsel %vm943_vm10, %v876_v16, %v931_v58  ;;  %v1033_v27 = vsel %vm947_vm11, %v876_v16, %v931_v58  ;;  %v1036_v8 = vsel %vm951_vm12, %v876_v16, %v931_v58  ;;  %1174 = vst [vmem:[#allocation1 + $0x3] ss:$9 sm:$0xff] %v1026_v22 }
 0x1d5   : > { %v1032_v12 = vrot.slane %v1030_v26, 1  ;;  %v1035_v29 = vrot.slane %v1033_v27, 2  ;;  %v1038_v60 = vrot.slane %v1036_v8, 3  ;;  %1175 = vst [vmem:[#allocation1 + $0x4] ss:$9 sm:$0xff] %v1029_v25  ;;  %v794_v58 = vrot.slane %v2753_v33, 4 }
 0x1d6   : > { %v793_v25 = vrot.slane %v2748_v30, 4  ;;  %v830_v32 = vsel %vm817_vm5, %v2748_v30, %v2358_v21 }
 0x1d7   : > { %1177 = vst [vmem:[#allocation1 + $0x5] ss:$9 sm:$0xff] %v1032_v12 }
 0x1d8   : > { %1179 = vst [vmem:[#allocation1 + $0x6] ss:$9 sm:$0xff] %v1035_v29  ;;  %v795_v35 = vsel %vm767_vm7, %v793_v25, %v794_v58 }
 0x1d9   : > { %1181 = vst [vmem:[#allocation1 + $0x7] ss:$9 sm:$0xff] %v1038_v60  ;;  %v831_v60 = vsel %vm817_vm5, %v2753_v33, %v2359_v20 }
 0x1da   : > { %v2352_v36 = vpop.permute.xlu0 %2351 }
 0x1db   : > { %v2342_v37 = vpop.permute.xlu1 %2341  ;;  %v2353_v38 = vunpack.i.l.bf16 %v2352_v36  ;;  %v2354_v45 = vunpack.i.h.bf16 %v2352_v36 }
 0x1dc   : > { %v2344_v59 = vunpack.i.h.bf16 %v2342_v37  ;;  %v2343_v40 = vunpack.i.l.bf16 %v2342_v37 }
 0x1dd   : > { %v861_v42 = vsel %vm851_vm8, %v844_v46, %v2353_v38 }
 0x1de   : > { %v828_v44 = vsel %vm817_vm5, %v2730_v11, %v2343_v40  ;;  %v877_v47 = vpack.c.bf16 %v788_v43, %v861_v42  ;;  %v829_v53 = vsel %vm817_vm5, %v2734_v15, %v2344_v59  ;;  %v792_v15 = vsel %vm767_vm7, %v790_v39, %v2806_v18 }
 0x1df   : > { %v845_v48 = vsel %vm834_vm6, %v828_v44, %v2348_v41  ;;  %v846_v3 = vsel %vm834_vm6, %v829_v53, %v2349_v55  ;;  %v796_v39 = vsel %vm767_vm7, %v794_v58, %v2806_v18 }
 0x1e0   : > { %v862_v51 = vsel %vm851_vm8, %v845_v48, %v2354_v45  ;;  %v932_v52 = vrot.slane %v877_v47, 3  ;;  %v1182_v56 = vld [vmem:[#allocation1] sm:$0xff]  ;;  %v1183_v57 = vld [vmem:[#allocation1 + $0x9] sm:$0xff] }
 0x1e1   : > { %v878_v23 = vpack.c.bf16 %v791_v49, %v862_v51 }
 0x1e2   : > { %v1041_v61 = vsel %vm939_vm9, %v877_v47, %v932_v52  ;;  %v1042_v11 = vsel %vm943_vm10, %v877_v47, %v932_v52  ;;  %v1045_v62 = vsel %vm947_vm11, %v877_v47, %v932_v52  ;;  %v2372_v49 = vpop.permute.xlu2 %2371 }
 0x1e3   : > { %v933_v31 = vrot.slane %v878_v23, 3  ;;  %v1044_v0 = vrot.slane %v1042_v11, 1  ;;  %v1047_v1 = vrot.slane %v1045_v62, 2  ;;  %1184 = vst [vmem:[#allocation1] ss:$9 sm:$0xff] %v1041_v61  ;;  %v742_v2 = vpop.permute.xlu1 %741  ;;  %1426 = vmatmul.bf16.gmra.mxu1 %v1182_v56  ;;  %2164 = vmatmul.msk.bf16.gmra.mxu2 %vm817_vm5, %v1183_v57  ;;  %v2374_v61 = vunpack.i.h.bf16 %v2372_v49 }
 0x1e4   : > { %v863_v4 = vsel %vm851_vm8, %v846_v3, %v742_v2  ;;  %v2373_v11 = vunpack.i.l.bf16 %v2372_v49  ;;  %v798_v62 = vrot.slane %v2783_v54, 4 }
 0x1e5   : > { %v1050_v5 = vsel %vm939_vm9, %v878_v23, %v933_v31  ;;  %v1051_v7 = vsel %vm943_vm10, %v878_v23, %v933_v31  ;;  %v1054_v9 = vsel %vm947_vm11, %v878_v23, %v933_v31  ;;  %v1057_v10 = vsel %vm951_vm12, %v878_v23, %v933_v31  ;;  %1186 = vst [vmem:[#allocation1 + $0x1] ss:$9 sm:$0xff] %v1044_v0 }
 0x1e6   : > { %v1053_v14 = vrot.slane %v1051_v7, 1  ;;  %v1056_v6 = vrot.slane %v1054_v9, 2  ;;  %v1059_v16 = vrot.slane %v1057_v10, 3  ;;  %1188 = vst [vmem:[#allocation1 + $0x2] ss:$9 sm:$0xff] %v1047_v1  ;;  %v879_v17 = vpack.c.bf16 %v792_v15, %v863_v4 }
 0x1e7   : > { %1189 = vst [vmem:[#allocation1 + $0x3] ss:$9 sm:$0xff] %v1050_v5  ;;  %v797_v0 = vrot.slane %v2772_v50, 4  ;;  %v833_v15 = vsel %vm817_vm5, %v2783_v54, %v2374_v61  ;;  %v832_v4 = vsel %vm817_vm5, %v2772_v50, %v2373_v11 }
 0x1e8   : > { %1191 = vst [vmem:[#allocation1 + $0x4] ss:$9 sm:$0xff] %v1053_v14  ;;  %v934_v19 = vrot.slane %v879_v17, 3 }
 0x1e9   : > { %1193 = vst [vmem:[#allocation1 + $0x5] ss:$9 sm:$0xff] %v1056_v6  ;;  %v799_v14 = vsel %vm767_vm7, %v797_v0, %v798_v62  ;;  %v800_v6 = vsel %vm767_vm7, %v798_v62, %v2806_v18 }
 0x1ea   : > { %1195 = vst [vmem:[#allocation1 + $0x6] ss:$9 sm:$0xff] %v1059_v16  ;;  %v1062_v22 = vsel %vm939_vm9, %v879_v17, %v934_v19  ;;  %v2362_v27 = vpop.permute.xlu0 %2361  ;;  %v1063_v34 = vsel %vm943_vm10, %v879_v17, %v934_v19  ;;  %v1066_v38 = vsel %vm947_vm11, %v879_v17, %v934_v19 }
 0x1eb   : > { %1196 = vst [vmem:[#allocation1 + $0x7] ss:$9 sm:$0xff] %v1062_v22  ;;  %v2367_v26 = vpop.permute.xlu1 %2366  ;;  %v2364_v12 = vunpack.i.h.bf16 %v2362_v27  ;;  %v2363_v29 = vunpack.i.l.bf16 %v2362_v27  ;;  %v1065_v30 = vrot.slane %v1063_v34, 1  ;;  %v1068_v41 = vrot.slane %v1066_v38, 2 }
 0x1ec   : > { %v2369_v8 = vunpack.i.h.bf16 %v2367_v26  ;;  %v2368_v28 = vunpack.i.l.bf16 %v2367_v26 }
 0x1ed   : > { %v848_v36 = vsel %vm834_vm6, %v831_v60, %v2364_v12  ;;  %v847_v37 = vsel %vm834_vm6, %v830_v32, %v2363_v29 }
 0x1ee   : > { %v865_v59 = vsel %vm851_vm8, %v848_v36, %v2369_v8  ;;  %v864_v33 = vsel %vm851_vm8, %v847_v37, %v2368_v28  ;;  %v2985_v8 = vld [vmem:[%s3315_s3] ss:$0 sm:$0xff] }
 0x1ef   : > { %v881_v40 = vpack.c.bf16 %v796_v39, %v865_v59  ;;  %v880_v46 = vpack.c.bf16 %v795_v35, %v864_v33  ;;  %v2992_v37 = vrot.slane %v2985_v8, 2  ;;  %v2995_v38 = vrot.slane %v2985_v8, 4 }
 0x1f0   : > { %v3002_v39 = vrot.slane %v2985_v8, 6 }
 0x1f1   : > { %v936_v63 = vrot.slane %v881_v40, 3  ;;  %v935_v44 = vrot.slane %v880_v46, 3 }
 0x1f2   : > { %v1197_v43 = vld [vmem:[#allocation1] sm:$0xff]  ;;  %v1198_v42 = vld [vmem:[#allocation1 + $0x9] sm:$0xff] }
 0x1f3   : > { %1200 = vst [vmem:[#allocation1] ss:$9 sm:$0xff] %v1065_v30  ;;  %1431 = vmatmul.bf16.gmra.mxu1 %v1197_v43  ;;  %2165 = vmatmul.msk.bf16.gmra.mxu2 %vm817_vm5, %v1198_v42  ;;  %v1083_v45 = vsel %vm939_vm9, %v881_v40, %v936_v63  ;;  %v1084_v47 = vsel %vm943_vm10, %v881_v40, %v936_v63 }
 0x1f4   : > { %1202 = vst [vmem:[#allocation1 + $0x1] ss:$9 sm:$0xff] %v1068_v41  ;;  %v1071_v48 = vsel %vm939_vm9, %v880_v46, %v935_v44  ;;  %v1086_v51 = vrot.slane %v1084_v47, 1  ;;  %v1072_v52 = vsel %vm943_vm10, %v880_v46, %v935_v44  ;;  %v1075_v53 = vsel %vm947_vm11, %v880_v46, %v935_v44 }
 0x1f5   : > { %1203 = vst [vmem:[#allocation1 + $0x2] ss:$9 sm:$0xff] %v1071_v48  ;;  %v1074_v55 = vrot.slane %v1072_v52, 1  ;;  %v1077_v23 = vrot.slane %v1075_v53, 2  ;;  %v1078_v56 = vsel %vm951_vm12, %v880_v46, %v935_v44  ;;  %v1087_v9 = vsel %vm947_vm11, %v881_v40, %v936_v63 }
 0x1f6   : > { %1210 = vst [vmem:[#allocation1 + $0x6] ss:$9 sm:$0xff] %v1083_v45  ;;  %v1080_v57 = vrot.slane %v1078_v56, 3  ;;  %v1089_v50 = vrot.slane %v1087_v9, 2 }
 0x1f7   : > { %1212 = vst [vmem:[#allocation1 + $0x7] ss:$9 sm:$0xff] %v1086_v51 }
 0x1f8   : > { %1205 = vst [vmem:[#allocation1 + $0x3] ss:$9 sm:$0xff] %v1074_v55 }
 0x1f9   : > { %1207 = vst [vmem:[#allocation1 + $0x4] ss:$9 sm:$0xff] %v1077_v23 }
 0x1fa   : > { %1209 = vst [vmem:[#allocation1 + $0x5] ss:$9 sm:$0xff] %v1080_v57  ;;  %v2377_v31 = vpop.permute.xlu0 %2376 }
 0x1fb   : > { %v2382_v1 = vpop.permute.xlu1 %2381  ;;  %v2379_v2 = vunpack.i.h.bf16 %v2377_v31  ;;  %v2378_v3 = vunpack.i.l.bf16 %v2377_v31 }
 0x1fc   : > { %v2384_v5 = vunpack.i.h.bf16 %v2382_v1  ;;  %v2383_v7 = vunpack.i.l.bf16 %v2382_v1 }
 0x1fd   : > { %v850_v10 = vsel %vm834_vm6, %v833_v15, %v2379_v2  ;;  %v849_v13 = vsel %vm834_vm6, %v832_v4, %v2378_v3 }
 0x1fe   : > { %v867_v16 = vsel %vm851_vm8, %v850_v10, %v2384_v5  ;;  %v866_v54 = vsel %vm851_vm8, %v849_v13, %v2383_v7 }
 0x1ff   : > { %v883_v17 = vpack.c.bf16 %v800_v6, %v867_v16  ;;  %v882_v19 = vpack.c.bf16 %v799_v14, %v866_v54 }
 0x201   : > { %v1213_v20 = vld [vmem:[#allocation1] sm:$0xff]  ;;  %v1214_v21 = vld [vmem:[#allocation1 + $0x9] sm:$0xff]  ;;  %v938_v58 = vrot.slane %v883_v17, 3  ;;  %v937_v22 = vrot.slane %v882_v19, 3 }
 0x202   : > { %1216 = vst [vmem:[#allocation1] ss:$9 sm:$0xff] %v1089_v50 }
 0x203   : > { %v1104_v25 = vsel %vm939_vm9, %v883_v17, %v938_v58  ;;  %v1105_v26 = vsel %vm943_vm10, %v883_v17, %v938_v58  ;;  %v1108_v27 = vsel %vm947_vm11, %v883_v17, %v938_v58  ;;  %v1092_v18 = vsel %vm939_vm9, %v882_v19, %v937_v22  ;;  %1436 = vmatmul.bf16.gmra.mxu1 %v1213_v20 }
 0x204   : > { %v1107_v28 = vrot.slane %v1105_v26, 1  ;;  %v1093_v12 = vsel %vm943_vm10, %v882_v19, %v937_v22  ;;  %v1096_v29 = vsel %vm947_vm11, %v882_v19, %v937_v22  ;;  %1217 = vst [vmem:[#allocation1 + $0x1] ss:$9 sm:$0xff] %v1092_v18  ;;  %2166 = vmatmul.msk.bf16.gmra.mxu2 %vm817_vm5, %v1214_v21  ;;  %v1099_v34 = vsel %vm951_vm12, %v882_v19, %v937_v22 }
 0x205   : > { %v1095_v60 = vrot.slane %v1093_v12, 1  ;;  %v1098_v32 = vrot.slane %v1096_v29, 2  ;;  %1224 = vst [vmem:[#allocation1 + $0x5] ss:$9 sm:$0xff] %v1104_v25  ;;  %v1110_v35 = vrot.slane %v1108_v27, 2  ;;  %v1101_v36 = vrot.slane %v1099_v34, 3 }
 0x206   : > { %1226 = vst [vmem:[#allocation1 + $0x6] ss:$9 sm:$0xff] %v1107_v28 }
 0x207   : > { %1219 = vst [vmem:[#allocation1 + $0x2] ss:$9 sm:$0xff] %v1095_v60 }
 0x208   : > { %1221 = vst [vmem:[#allocation1 + $0x3] ss:$9 sm:$0xff] %v1098_v32 }
 0x209   : > { %1223 = vst [vmem:[#allocation1 + $0x4] ss:$9 sm:$0xff] %v1101_v36 }
 0x20a   : > { %1228 = vst [vmem:[#allocation1 + $0x7] ss:$9 sm:$0xff] %v1110_v35 }
 0x20b   : > { %1306 = vst [vmem:[#allocation1 + $0x20] ss:$4 sm:$0xff] %v2985_v8 }
 0x20c   : > { %1308 = vst [vmem:[#allocation1 + $0x21] ss:$4 sm:$0xff] %v2992_v37 }
 0x20d   : > { %1310 = vst [vmem:[#allocation1 + $0x22] ss:$4 sm:$0xff] %v2995_v38 }
 0x20e   : > { %1312 = vst [vmem:[#allocation1 + $0x23] ss:$4 sm:$0xff] %v2985_v8 }
 0x211   : > { %v1229_v59 = vld [vmem:[#allocation1] sm:$0xff]  ;;  %v1230_v33 = vld [vmem:[#allocation1 + $0x9] sm:$0xff] }
 0x212   : > { %1298 = vst [vmem:[#allocation1] ss:$4 sm:$0xff] %v2985_v8 }
 0x213   : > { %1300 = vst [vmem:[#allocation1 + $0x1] ss:$4 sm:$0xff] %v2992_v37  ;;  %1441 = vmatmul.bf16.gmra.mxu1 %v1229_v59 }
 0x214   : > { %1302 = vst [vmem:[#allocation1 + $0x2] ss:$4 sm:$0xff] %v2995_v38  ;;  %2167 = vmatmul.msk.bf16.gmra.mxu2 %vm817_vm5, %v1230_v33 }
 0x215   : > { %1304 = vst [vmem:[#allocation1 + $0x3] ss:$4 sm:$0xff] %v3002_v39  ;;  %v1314_v40 = vld.sshfl [vmem:[#allocation1 + $0x20] sm:$0xff pattern:$0x73625140] }
 0x216   : > { %1319 = vst [vmem:[#allocation1 + $0x20] ss:$4 sm:$0xff] %v2992_v37 }
 0x217   : > { %1320 = vst [vmem:[#allocation1 + $0x21] ss:$4 sm:$0xff] %v2995_v38 }
 0x218   : > { %1321 = vst [vmem:[#allocation1 + $0x22] ss:$4 sm:$0xff] %v2985_v8 }
 0x219   : > { %1322 = vst [vmem:[#allocation1 + $0x23] ss:$4 sm:$0xff] %v2992_v37 }
 0x21c   : > { %v3013_v46 = vld.sshfl [vmem:[#allocation1] sm:$0xff pattern:$0x73625140] }
 0x21d   : > { %1315 = vst [vmem:[#allocation1] ss:$4 sm:$0xff] %v2992_v37 }
 0x21e   : > { %1316 = vst [vmem:[#allocation1 + $0x1] ss:$4 sm:$0xff] %v2995_v38 }
 0x21f   : > { %1317 = vst [vmem:[#allocation1 + $0x2] ss:$4 sm:$0xff] %v3002_v39 }
 0x220   : > { %1318 = vst [vmem:[#allocation1 + $0x3] ss:$4 sm:$0xff] %v2985_v8  ;;  %v3019_v30 = vld.sshfl [vmem:[#allocation1 + $0x20] sm:$0xff pattern:$0x73625140] }
 0x221   : > { %1329 = vst [vmem:[#allocation1 + $0x20] ss:$4 sm:$0xff] %v2995_v38 }
 0x222   : > { %1330 = vst [vmem:[#allocation1 + $0x21] ss:$4 sm:$0xff] %v2985_v8 }
 0x223   : > { %1331 = vst [vmem:[#allocation1 + $0x22] ss:$4 sm:$0xff] %v2992_v37 }
 0x224   : > { %1332 = vst [vmem:[#allocation1 + $0x23] ss:$4 sm:$0xff] %v2995_v38 }
 0x227   : > { %v1323_v41 = vld.sshfl [vmem:[#allocation1] sm:$0xff pattern:$0x73625140] }
 0x228   : > { %1325 = vst [vmem:[#allocation1] ss:$4 sm:$0xff] %v2995_v38 }
 0x229   : > { %1326 = vst [vmem:[#allocation1 + $0x1] ss:$4 sm:$0xff] %v3002_v39 }
 0x22a   : > { %1327 = vst [vmem:[#allocation1 + $0x2] ss:$4 sm:$0xff] %v2985_v8 }
 0x22b   : > { %1328 = vst [vmem:[#allocation1 + $0x3] ss:$4 sm:$0xff] %v2992_v37  ;;  %v3029_v43 = vld.sshfl [vmem:[#allocation1 + $0x20] sm:$0xff pattern:$0x73625140] }
 0x22c   : > { %1339 = vst [vmem:[#allocation1 + $0x20] ss:$4 sm:$0xff] %v2985_v8 }
 0x22d   : > { %1340 = vst [vmem:[#allocation1 + $0x21] ss:$4 sm:$0xff] %v2992_v37 }
 0x22e   : > { %1341 = vst [vmem:[#allocation1 + $0x22] ss:$4 sm:$0xff] %v2995_v38 }
 0x22f   : > { %1342 = vst [vmem:[#allocation1 + $0x23] ss:$4 sm:$0xff] %v3002_v39 }
 0x230   : > { %v1412_v42 = vpop.f32.mrf.mxu1 }
 0x231   : > { %v1413_v2 = vadd.f32 %v1412_v42, %v3013_v46 }
 0x232   : > { %v3035_v63 = vld.sshfl [vmem:[#allocation1] sm:$0xff pattern:$0x73625140] }
 0x233   : > { %1335 = vst [vmem:[#allocation1] ss:$4 sm:$0xff] %v3002_v39 }
 0x234   : > { %1336 = vst [vmem:[#allocation1 + $0x1] ss:$4 sm:$0xff] %v2985_v8 }
 0x235   : > { %1337 = vst [vmem:[#allocation1 + $0x2] ss:$4 sm:$0xff] %v2992_v37 }
 0x236   : > { %1338 = vst [vmem:[#allocation1 + $0x3] ss:$4 sm:$0xff] %v2995_v38  ;;  %v3041_v44 = vld.sshfl [vmem:[#allocation1 + $0x20] sm:$0xff pattern:$0x73625140]  ;;  %v1456_v45 = vpop.f32.mrf.mxu2 }
 0x237   : > { %1349 = vst [vmem:[#allocation1 + $0x20] ss:$4 sm:$0xff] %v2992_v37  ;;  %v1457_v5 = vadd.f32 %v1456_v45, %v1413_v2 }
 0x238   : > { %1350 = vst [vmem:[#allocation1 + $0x21] ss:$4 sm:$0xff] %v2995_v38  ;;  %v1414_v47 = vpop.f32.mrf.mxu1 }
 0x239   : > { %1351 = vst [vmem:[#allocation1 + $0x22] ss:$4 sm:$0xff] %v3002_v39  ;;  %v1415_v56 = vadd.f32 %v1414_v47, %v1314_v40  ;;  %v1505_v54 = vrot.slane %v1457_v5, 2  ;;  %v1589_v50 = vmax.f32 %v1457_v5, 0.0  ;;  %v1506_v26 = vrot.slane %v1457_v5, 4 }
 0x23a   : > { %1352 = vst [vmem:[#allocation1 + $0x23] ss:$4 sm:$0xff] %v2985_v8  ;;  %v1507_v18 = vrot.slane %v1457_v5, 6 }
 0x23b   : > { %v1590_v20 = vmax.f32 %v1505_v54, 0.0  ;;  %v1591_v60 = vmax.f32 %v1506_v26, 0.0 }
 0x23c   : > { %v1592_v32 = vmax.f32 %v1507_v18, 0.0 }
 0x23d   : > { %v3047_v48 = vld.sshfl [vmem:[#allocation1] sm:$0xff pattern:$0x73625140] }
 0x23e   : > { %1345 = vst [vmem:[#allocation1] ss:$4 sm:$0xff] %v2985_v8  ;;  %v1458_v49 = vpop.f32.mrf.mxu2 }
 0x23f   : > { %1346 = vst [vmem:[#allocation1 + $0x1] ss:$4 sm:$0xff] %v2992_v37  ;;  %v3068_v61 = vadd.f32 %v1458_v49, %v1415_v56 }
 0x240   : > { %1347 = vst [vmem:[#allocation1 + $0x2] ss:$4 sm:$0xff] %v2995_v38  ;;  %v1417_v51 = vpop.f32.mrf.mxu1 }
 0x241   : > { %v3052_v52 = vld.sshfl [vmem:[#allocation1 + $0x20] sm:$0xff pattern:$0x73625140]  ;;  %1348 = vst [vmem:[#allocation1 + $0x3] ss:$4 sm:$0xff] %v2985_v8  ;;  %v1508_v31 = vrot.slane %v3068_v61, 2  ;;  %v1418_v15 = vadd.f32 %v1417_v51, %v1323_v41 }
 0x242   : > { %1359 = vst [vmem:[#allocation1 + $0x20] ss:$4 sm:$0xff] %v2995_v38  ;;  %v1509_v0 = vrot.slane %v3068_v61, 4  ;;  %v1593_v3 = vmax.f32 %v3068_v61, 0.0 }
 0x243   : > { %1360 = vst [vmem:[#allocation1 + $0x21] ss:$4 sm:$0xff] %v3002_v39  ;;  %v1594_v4 = vmax.f32 %v1508_v31, 0.0 }
 0x244   : > { %1361 = vst [vmem:[#allocation1 + $0x22] ss:$4 sm:$0xff] %v2985_v8  ;;  %v1595_v7 = vmax.f32 %v1509_v0, 0.0 }
 0x245   : > { %1362 = vst [vmem:[#allocation1 + $0x23] ss:$4 sm:$0xff] %v2992_v37 }
 0x246   : > { %v1461_v53 = vpop.f32.mrf.mxu2 }
 0x247   : > { %v3081_v9 = vadd.f32 %v1461_v53, %v1418_v15 }
 0x248   : > { %v1419_v55 = vpop.f32.mrf.mxu1  ;;  %v3059_v23 = vld.sshfl [vmem:[#allocation1] sm:$0xff pattern:$0x73625140] }
 0x249   : > { %1355 = vst [vmem:[#allocation1] ss:$4 sm:$0xff] %v2992_v37  ;;  %v1420_v10 = vadd.f32 %v1419_v55, %v3019_v30  ;;  %v1513_v17 = vrot.slane %v3081_v9, 6  ;;  %v1511_v46 = vrot.slane %v3081_v9, 2  ;;  %v1512_v41 = vrot.slane %v3081_v9, 4 }
 0x24a   : > { %1356 = vst [vmem:[#allocation1 + $0x1] ss:$4 sm:$0xff] %v2995_v38 }
 0x24b   : > { %1357 = vst [vmem:[#allocation1 + $0x2] ss:$4 sm:$0xff] %v2985_v8  ;;  %v1600_v21 = vmax.f32 %v1513_v17, 0.0  ;;  %v1598_v47 = vmax.f32 %v1511_v46, 0.0  ;;  %v1599_v51 = vmax.f32 %v1512_v41, 0.0 }
 0x24c   : > { %v3064_v57 = vld.sshfl [vmem:[#allocation1 + $0x20] sm:$0xff pattern:$0x73625140]  ;;  %1358 = vst [vmem:[#allocation1 + $0x3] ss:$4 sm:$0xff] %v2992_v37 }
 0x24d   : > { %1372 = vst [vmem:[#allocation1 + $0x23] ss:$4 sm:$0xff] %v2995_v38 }
 0x24e   : > { %1369 = vst [vmem:[#allocation1 + $0x20] ss:$4 sm:$0xff] %v3002_v39  ;;  %v1463_v11 = vpop.f32.mrf.mxu2  ;;  %v1510_v39 = vrot.slane %v3068_v61, 6 }
 0x24f   : > { %1370 = vst [vmem:[#allocation1 + $0x21] ss:$4 sm:$0xff] %v2985_v8  ;;  %v3088_v6 = vadd.f32 %v1463_v11, %v1420_v10 }
 0x250   : > { %1371 = vst [vmem:[#allocation1 + $0x22] ss:$4 sm:$0xff] %v2992_v37  ;;  %v1422_v62 = vpop.f32.mrf.mxu1  ;;  %v1596_v45 = vmax.f32 %v1510_v39, 0.0 }
 0x251   : > { %v1514_v19 = vrot.slane %v3088_v6, 2  ;;  %v1423_v58 = vadd.f32 %v1422_v62, %v3035_v63  ;;  %v1601_v27 = vmax.f32 %v3088_v6, 0.0  ;;  %v1515_v31 = vrot.slane %v3088_v6, 4 }
 0x252   : > { %v1516_v2 = vrot.slane %v3088_v6, 6 }
 0x253   : > { %v3075_v1 = vld.sshfl [vmem:[#allocation1] sm:$0xff pattern:$0x73625140] }
 0x254   : > { %1365 = vst [vmem:[#allocation1] ss:$4 sm:$0xff] %v2995_v38 }
 0x255   : > { %1366 = vst [vmem:[#allocation1 + $0x1] ss:$4 sm:$0xff] %v2985_v8  ;;  %v1602_v8 = vmax.f32 %v1514_v19, 0.0 }
 0x256   : > { %v1466_v13 = vpop.f32.mrf.mxu2  ;;  %1367 = vst [vmem:[#allocation1 + $0x2] ss:$4 sm:$0xff] %v2992_v37 }
 0x257   : > { %v3085_v14 = vld.sshfl [vmem:[#allocation1 + $0x20] sm:$0xff pattern:$0x73625140]  ;;  %1368 = vst [vmem:[#allocation1 + $0x3] ss:$4 sm:$0xff] %v2995_v38  ;;  %v3096_v28 = vadd.f32 %v1466_v13, %v1423_v58  ;;  %v1604_v13 = vmax.f32 %v1516_v2, 0.0 }
 0x258   : > { %1720 = vst [vmem:[#allocation1 + $0x20] ss:$4 sm:$0xff] %v1593_v3  ;;  %v1424_v16 = vpop.f32.mrf.mxu1 }
 0x259   : > { %1722 = vst [vmem:[#allocation1 + $0x21] ss:$4 sm:$0xff] %v1594_v4  ;;  %v1518_v34 = vrot.slane %v3096_v28, 4  ;;  %v1425_v35 = vadd.f32 %v1424_v16, %v3029_v43  ;;  %v1519_v36 = vrot.slane %v3096_v28, 6  ;;  %v1517_v5 = vrot.slane %v3096_v28, 2 }
 0x25a   : > { %1724 = vst [vmem:[#allocation1 + $0x22] ss:$4 sm:$0xff] %v1595_v7  ;;  %v1605_v54 = vmax.f32 %v3096_v28, 0.0 }
 0x25b   : > { %v1607_v59 = vmax.f32 %v1518_v34, 0.0  ;;  %v1608_v30 = vmax.f32 %v1519_v36, 0.0  ;;  %v1606_v17 = vmax.f32 %v1517_v5, 0.0  ;;  %v2222_v34 = vld [vmem:[%s3317_s5 + $0x38] sm:$0xff] }
 0x25c   : > { %1991 = vmatpush.bf16.msra.mxu3 %v2222_v34 }
 0x25e   : > { %v1468_v22 = vpop.f32.mrf.mxu2  ;;  %v3093_v25 = vld.sshfl [vmem:[#allocation1] sm:$0xff pattern:$0x73625140] }
 0x25f   : > { %1712 = vst [vmem:[#allocation1] ss:$4 sm:$0xff] %v1589_v50  ;;  %v3103_v37 = vadd.f32 %v1468_v22, %v1425_v35 }
 0x260   : > { %v1427_v12 = vpop.f32.mrf.mxu1  ;;  %1714 = vst [vmem:[#allocation1 + $0x1] ss:$4 sm:$0xff] %v1590_v20 }
 0x261   : > { %v3098_v29 = vld.sshfl [vmem:[#allocation1 + $0x20] sm:$0xff pattern:$0x73625140]  ;;  %1716 = vst [vmem:[#allocation1 + $0x2] ss:$4 sm:$0xff] %v1591_v60  ;;  %v1428_v33 = vadd.f32 %v1427_v12, %v3047_v48  ;;  %v1609_v43 = vmax.f32 %v3103_v37, 0.0 }
 0x262   : > { %1731 = vst [vmem:[#allocation1 + $0x20] ss:$4 sm:$0xff] %v1600_v21  ;;  %v1597_v48 = vmax.f32 %v3081_v9, 0.0  ;;  %v1603_v9 = vmax.f32 %v1515_v31, 0.0  ;;  %v1520_v26 = vrot.slane %v3103_v37, 2  ;;  %v1522_v12 = vrot.slane %v3103_v37, 6 }
 0x263   : > { %1732 = vst [vmem:[#allocation1 + $0x21] ss:$4 sm:$0xff] %v1601_v27 }
 0x264   : > { %1733 = vst [vmem:[#allocation1 + $0x22] ss:$4 sm:$0xff] %v1602_v8  ;;  %v1521_v8 = vrot.slane %v3103_v37, 4  ;;  %v1610_v60 = vmax.f32 %v1520_v26, 0.0  ;;  %v1612_v35 = vmax.f32 %v1522_v12, 0.0  ;;  %v2221_v37 = vld [vmem:[%s3317_s5 + $0x30] sm:$0xff] }
 0x265   : > { %1718 = vst [vmem:[#allocation1 + $0x3] ss:$4 sm:$0xff] %v1592_v32  ;;  %1992 = vmatpush.bf16.msra.mxu3 %v2221_v37  ;;  %v2216_v26 = vld [vmem:[%s3317_s5 + $0x8] sm:$0xff] }
 0x266   : > { %v1471_v38 = vpop.f32.mrf.mxu2  ;;  %v1611_v32 = vmax.f32 %v1521_v8, 0.0 }
 0x267   : > { %v3112_v42 = vadd.f32 %v1471_v38, %v1428_v33 }
 0x268   : > { %v3107_v40 = vpop.f32.mrf.mxu1 }
 0x269   : > { %v1523_v53 = vrot.slane %v3112_v42, 2  ;;  %v1524_v56 = vrot.slane %v3112_v42, 4  ;;  %v1525_v61 = vrot.slane %v3112_v42, 6  ;;  %v1430_v36 = vadd.f32 %v3107_v40, %v3041_v44 }
 0x26a   : > { %v1613_v38 = vmax.f32 %v3112_v42, 0.0  ;;  %v2220_v42 = vld [vmem:[%s3317_s5 + $0x28] sm:$0xff] }
 0x26b   : > { %v3114_v63 = vld.sshfl [vmem:[#allocation1 + $0x20] sm:$0xff pattern:$0x73625140]  ;;  %v1614_v62 = vmax.f32 %v1523_v53, 0.0  ;;  %v1615_v0 = vmax.f32 %v1524_v56, 0.0  ;;  %v1616_v3 = vmax.f32 %v1525_v61, 0.0  ;;  %1993 = vmatpush.bf16.msra.mxu3 %v2220_v42 }
 0x26c   : > { %1740 = vst [vmem:[#allocation1 + $0x20] ss:$4 sm:$0xff] %v1607_v59  ;;  %v3116_v49 = vld.sshfl [vmem:[#allocation1] sm:$0xff pattern:$0x73625140] }
 0x26d   : > { %1741 = vst [vmem:[#allocation1 + $0x21] ss:$4 sm:$0xff] %v1608_v30  ;;  %v2219_v56 = vld [vmem:[%s3317_s5 + $0x20] sm:$0xff] }
 0x26e   : > { %1742 = vst [vmem:[#allocation1 + $0x22] ss:$4 sm:$0xff] %v1609_v43  ;;  %v1473_v55 = vpop.f32.mrf.mxu2 }
 0x26f   : > { %1727 = vst [vmem:[#allocation1] ss:$4 sm:$0xff] %v1596_v45  ;;  %v1474_v33 = vadd.f32 %v1473_v55, %v1430_v36  ;;  %1994 = vmatpush.bf16.msra.mxu3 %v2219_v56 }
 0x270   : > { %v1432_v11 = vpop.f32.mrf.mxu1  ;;  %1728 = vst [vmem:[#allocation1 + $0x1] ss:$4 sm:$0xff] %v1597_v48 }
 0x271   : > { %1729 = vst [vmem:[#allocation1 + $0x2] ss:$4 sm:$0xff] %v1598_v47  ;;  %v1433_v4 = vadd.f32 %v1432_v11, %v3059_v23  ;;  %v1526_v45 = vrot.slane %v1474_v33, 2  ;;  %v1527_v47 = vrot.slane %v1474_v33, 4  ;;  %v1617_v53 = vmax.f32 %v1474_v33, 0.0 }
 0x272   : > { %1730 = vst [vmem:[#allocation1 + $0x3] ss:$4 sm:$0xff] %v1599_v51  ;;  %v1528_v51 = vrot.slane %v1474_v33, 6 }
 0x273   : > { %v1618_v61 = vmax.f32 %v1526_v45, 0.0 }
 0x275   : > { %v3124_v15 = vld.sshfl [vmem:[#allocation1 + $0x20] sm:$0xff pattern:$0x73625140] }
 0x276   : > { %1749 = vst [vmem:[#allocation1 + $0x20] ss:$4 sm:$0xff] %v1614_v62  ;;  %v1476_v7 = vpop.f32.mrf.mxu2  ;;  %v1619_v62 = vmax.f32 %v1527_v47, 0.0 }
 0x277   : > { %1750 = vst [vmem:[#allocation1 + $0x21] ss:$4 sm:$0xff] %v1615_v0  ;;  %v3128_v10 = vadd.f32 %v1476_v7, %v1433_v4  ;;  %v1620_v0 = vmax.f32 %v1528_v51, 0.0 }
 0x278   : > { %1751 = vst [vmem:[#allocation1 + $0x22] ss:$4 sm:$0xff] %v1616_v3  ;;  %v1434_v16 = vpop.f32.mrf.mxu1 }
 0x279   : > { %v1529_v6 = vrot.slane %v3128_v10, 2  ;;  %v1530_v19 = vrot.slane %v3128_v10, 4  ;;  %v3133_v50 = vld.sshfl [vmem:[#allocation1] sm:$0xff pattern:$0x73625140]  ;;  %v1621_v23 = vmax.f32 %v3128_v10, 0.0  ;;  %v1435_v21 = vadd.f32 %v1434_v16, %v3052_v52 }
 0x27a   : > { %1736 = vst [vmem:[#allocation1] ss:$4 sm:$0xff] %v1603_v9  ;;  %v1531_v16 = vrot.slane %v3128_v10, 6  ;;  %v2386_v10 = vld [vmem:[%s3316_s4] ss:$0 sm:$0xff] }
 0x27b   : > { %1737 = vst [vmem:[#allocation1 + $0x1] ss:$4 sm:$0xff] %v1604_v13  ;;  %v1622_v20 = vmax.f32 %v1529_v6, 0.0  ;;  %v1623_v58 = vmax.f32 %v1530_v19, 0.0  ;;  %v1646_v13 = vshrl.u32 %v299_v24, 7  ;;  %v2217_v6 = vld [vmem:[%s3317_s5 + $0x10] sm:$0xff] }
 0x27c   : > { %1738 = vst [vmem:[#allocation1 + $0x2] ss:$4 sm:$0xff] %v1605_v54 }
 0x27d   : > { %1739 = vst [vmem:[#allocation1 + $0x3] ss:$4 sm:$0xff] %v1606_v17  ;;  %vm3216_vm14 = vcmp.lt.s32.totalorder %v1646_v13, %v2386_v10 }
 0x27e   : > { %v1478_v22 = vpop.f32.mrf.mxu2 }
 0x27f   : > { %v3138_v27 = vadd.f32 %v1478_v22, %v1435_v21  ;;  %v3140_v18 = vld.sshfl [vmem:[#allocation1 + $0x20] sm:$0xff pattern:$0x73625140]  ;;  %v1624_v21 = vmax.f32 %v1531_v16, 0.0 }
 0x280   : > { %v1437_v28 = vpop.f32.mrf.mxu1  ;;  %1758 = vst [vmem:[#allocation1 + $0x20] ss:$4 sm:$0xff] %v1621_v23 }
 0x281   : > { %1759 = vst [vmem:[#allocation1 + $0x21] ss:$4 sm:$0xff] %v1622_v20  ;;  %v1534_v52 = vrot.slane %v3138_v27, 6  ;;  %v1438_v39 = vadd.f32 %v1437_v28, %v3075_v1  ;;  %v1532_v17 = vrot.slane %v3138_v27, 2  ;;  %v1533_v24 = vrot.slane %v3138_v27, 4 }
 0x282   : > { %1760 = vst [vmem:[#allocation1 + $0x22] ss:$4 sm:$0xff] %v1623_v58  ;;  %v1647_v20 = vadd.s32 8, %v1646_v13  ;;  %v1625_v22 = vmax.f32 %v3138_v27, 0.0  ;;  %v2215_v27 = vld [vmem:[%s3317_s5] sm:$0xff] }
 0x283   : > { %v1628_v46 = vmax.f32 %v1534_v52, 0.0  ;;  %v1627_v28 = vmax.f32 %v1533_v24, 0.0 }
 0x284   : > { %v3155_v59 = vld.sshfl [vmem:[#allocation1] sm:$0xff pattern:$0x73625140]  ;;  %vm3198_vm13 = vcmp.lt.s32.totalorder %v1647_v20, %v2386_v10 }
 0x285   : > { %1745 = vst [vmem:[#allocation1] ss:$4 sm:$0xff] %v1610_v60  ;;  %v1809_v34 = vsel %vm3198_vm13, %v3114_v63, 0.0  ;;  %v1807_v36 = vsel %vm3198_vm13, %v3098_v29, 0.0  ;;  %v1811_v63 = vsel %vm3198_vm13, %v3124_v15, 0.0  ;;  %v1813_v29 = vsel %vm3198_vm13, %v3140_v18, 0.0 }
 0x286   : > { %1746 = vst [vmem:[#allocation1 + $0x1] ss:$4 sm:$0xff] %v1611_v32  ;;  %v1830_v33 = vsel %vm611_vm3, %v1809_v34, -inf  ;;  %v1838_v42 = vsel %vm611_vm3, %v1811_v63, -inf }
 0x287   : > { %v1481_v30 = vpop.f32.mrf.mxu2  ;;  %1747 = vst [vmem:[#allocation1 + $0x2] ss:$4 sm:$0xff] %v1612_v35 }
 0x288   : > { %v3157_v41 = vadd.f32 %v1481_v30, %v1438_v39  ;;  %v1439_v43 = vpop.f32.mrf.mxu1  ;;  %1748 = vst [vmem:[#allocation1 + $0x3] ss:$4 sm:$0xff] %v1613_v38 }
 0x289   : > { %v3159_v44 = vld.sshfl [vmem:[#allocation1 + $0x20] sm:$0xff pattern:$0x73625140]  ;;  %v1440_v55 = vadd.f32 %v1439_v43, %v3064_v57  ;;  %v2218_v57 = vld [vmem:[%s3317_s5 + $0x18] sm:$0xff]  ;;  %v1808_v43 = vsel %vm3216_vm14, %v3133_v50, 0.0 }
 0x28a   : > { %v1535_v1 = vrot.slane %v3157_v41, 2  ;;  %v1629_v40 = vmax.f32 %v3157_v41, 0.0  ;;  %1767 = vst [vmem:[#allocation1 + $0x20] ss:$4 sm:$0xff] %v1628_v46  ;;  %1995 = vmatpush.bf16.msra.mxu3 %v2218_v57  ;;  %v1536_v38 = vrot.slane %v3157_v41, 4  ;;  %v1537_v37 = vrot.slane %v3157_v41, 6 }
 0x28b   : > { %v1822_v46 = vsel %vm611_vm3, %v1807_v36, -inf  ;;  %v1806_v41 = vsel %vm3216_vm14, %v3116_v49, 0.0  ;;  %v1815_v15 = vsel %vm3198_vm13, %v3159_v44, 0.0  ;;  %v1831_v18 = vmax.f32 %v1808_v43, %v1830_v33 }
 0x28c   : > { %v1630_v48 = vmax.f32 %v1535_v1, 0.0  ;;  %1768 = vst [vmem:[#allocation1 + $0x21] ss:$4 sm:$0xff] %v1629_v40  ;;  %v1631_v1 = vmax.f32 %v1536_v38, 0.0  ;;  %v1632_v45 = vmax.f32 %v1537_v37, 0.0  ;;  %v1810_v44 = vsel %vm3216_vm14, %v3155_v59, 0.0 }
 0x28e   : > { %1769 = vst [vmem:[#allocation1 + $0x22] ss:$4 sm:$0xff] %v1630_v48  ;;  %1996 = vmatpush.bf16.msra.mxu3 %v2217_v6  ;;  %v1846_v48 = vsel %vm611_vm3, %v1813_v29, -inf }
 0x28f   : > { %v1483_v11 = vpop.f32.mrf.mxu2  ;;  %v3172_v3 = vld.sshfl [vmem:[#allocation1] sm:$0xff pattern:$0x73625140] }
 0x290   : > { %v3170_v31 = vadd.f32 %v1483_v11, %v1440_v55  ;;  %v1442_v2 = vpop.f32.mrf.mxu1  ;;  %1754 = vst [vmem:[#allocation1] ss:$4 sm:$0xff] %v1617_v53  ;;  %v1854_v53 = vsel %vm611_vm3, %v1815_v15, -inf  ;;  %v1839_v11 = vmax.f32 %v1810_v44, %v1838_v42 }
 0x291   : > { %1755 = vst [vmem:[#allocation1 + $0x1] ss:$4 sm:$0xff] %v1618_v61  ;;  %v1443_v19 = vadd.f32 %v1442_v2, %v3093_v25  ;;  %v1626_v25 = vmax.f32 %v1532_v17, 0.0  ;;  %v1823_v61 = vmax.f32 %v1806_v41, %v1822_v46 }
 0x292   : > { %v1539_v4 = vrot.slane %v3170_v31, 4  ;;  %v1540_v5 = vrot.slane %v3170_v31, 6  ;;  %1756 = vst [vmem:[#allocation1 + $0x2] ss:$4 sm:$0xff] %v1619_v62  ;;  %1997 = vmatpush.bf16.msra.mxu3 %v2216_v26  ;;  %v1538_v30 = vrot.slane %v3170_v31, 2  ;;  %v1633_v50 = vmax.f32 %v3170_v31, 0.0 }
 0x293   : > { %1757 = vst [vmem:[#allocation1 + $0x3] ss:$4 sm:$0xff] %v1620_v0  ;;  %v1812_v0 = vsel %vm3216_vm14, %v3172_v3, 0.0  ;;  %v1824_v6 = vrot.slane %v1823_v61, 4  ;;  %v1840_v17 = vrot.slane %v1839_v11, 4 }
 0x294   : > { %v1635_v7 = vmax.f32 %v1539_v4, 0.0  ;;  %v1636_v9 = vmax.f32 %v1540_v5, 0.0  ;;  %v1634_v55 = vmax.f32 %v1538_v30, 0.0  ;;  %v1847_v59 = vmax.f32 %v1812_v0, %v1846_v48 }
 0x295   : > { %v3181_v54 = vld.sshfl [vmem:[#allocation1 + $0x20] sm:$0xff pattern:$0x73625140] }
 0x296   : > { %1776 = vst [vmem:[#allocation1 + $0x20] ss:$4 sm:$0xff] %v1635_v7  ;;  %1998 = vmatpush.bf16.msra.mxu3 %v2215_v27  ;;  %v1817_v49 = vsel %vm3198_vm13, %v3181_v54, 0.0 }
 0x297   : > { %v1486_v23 = vpop.f32.mrf.mxu2  ;;  %1777 = vst [vmem:[#allocation1 + $0x21] ss:$4 sm:$0xff] %v1636_v9  ;;  %v1862_v2 = vsel %vm611_vm3, %v1817_v49, -inf  ;;  %v1832_v9 = vrot.slane %v1831_v18, 4 }
 0x298   : > { %v3192_v58 = vadd.f32 %v1486_v23, %v1443_v19  ;;  %v1444_v8 = vpop.f32.mrf.mxu1  ;;  %v1848_v23 = vrot.slane %v1847_v59, 4 }
 0x299   : > { %v1445_v32 = vadd.f32 %v1444_v8, %v3085_v14  ;;  %v1841_v8 = vmax.f32 %v1839_v11, %v1840_v17 }
 0x29a   : > { %v1761_v60 = vld.sshfl [vmem:[#allocation1] sm:$0xff pattern:$0x73625140]  ;;  %v1637_v52 = vmax.f32 %v3192_v58, 0.0  ;;  %v1541_v13 = vrot.slane %v3192_v58, 2  ;;  %v1542_v54 = vrot.slane %v3192_v58, 4 }
 0x29b   : > { %1763 = vst [vmem:[#allocation1] ss:$4 sm:$0xff] %v1624_v21  ;;  %v1814_v31 = vsel %vm3216_vm14, %v1761_v60, 0.0  ;;  %v1543_v19 = vrot.slane %v3192_v58, 6  ;;  %v1833_v21 = vmax.f32 %v1831_v18, %v1832_v9  ;;  %v1849_v60 = vmax.f32 %v1847_v59, %v1848_v23 }
 0x29c   : > { %1764 = vst [vmem:[#allocation1 + $0x1] ss:$4 sm:$0xff] %v1625_v22  ;;  %v1855_v5 = vmax.f32 %v1814_v31, %v1854_v53  ;;  %v1638_v10 = vmax.f32 %v1541_v13, 0.0  ;;  %v1639_v26 = vmax.f32 %v1542_v54, 0.0  ;;  %v1842_v38 = vrot.slane %v1841_v8, 2 }
 0x29d   : > { %1765 = vst [vmem:[#allocation1 + $0x2] ss:$4 sm:$0xff] %v1626_v25  ;;  %v1825_v25 = vmax.f32 %v1823_v61, %v1824_v6  ;;  %v1850_v33 = vrot.slane %v1849_v60, 2 }
 0x29e   : > { %1766 = vst [vmem:[#allocation1 + $0x3] ss:$4 sm:$0xff] %v1627_v28  ;;  %v1856_v24 = vrot.slane %v1855_v5, 4  ;;  %v1640_v28 = vmax.f32 %v1543_v19, 0.0 }
 0x29f   : > { %v1488_v35 = vpop.f32.mrf.mxu2  ;;  %1778 = vst [vmem:[#allocation1 + $0x22] ss:$4 sm:$0xff] %v1637_v52  ;;  %v1826_v63 = vrot.slane %v1825_v25, 2  ;;  %v1851_v18 = vmax.f32 %v1849_v60, %v1850_v33 }
 0x2a0   : > { %v3214_v39 = vadd.f32 %v1488_v35, %v1445_v32  ;;  %v1857_v52 = vmax.f32 %v1855_v5, %v1856_v24  ;;  %v1834_v35 = vrot.slane %v1833_v21, 2 }
 0x2a2   : > { %v1544_v40 = vrot.slane %v3214_v39, 2  ;;  %v1545_v47 = vrot.slane %v3214_v39, 4  ;;  %v1546_v51 = vrot.slane %v3214_v39, 6  ;;  %v1641_v58 = vmax.f32 %v3214_v39, 0.0 }
 0x2a3   : > { %v1858_v29 = vrot.slane %v1857_v52, 2  ;;  %v1835_v41 = vmax.f32 %v1833_v21, %v1834_v35  ;;  %v1843_v39 = vmax.f32 %v1841_v8, %v1842_v38 }
 0x2a4   : > { %v1642_v62 = vmax.f32 %v1544_v40, 0.0  ;;  %v1643_v4 = vmax.f32 %v1545_v47, 0.0  ;;  %v1644_v57 = vmax.f32 %v1546_v51, 0.0  ;;  %v1827_v40 = vmax.f32 %v1825_v25, %v1826_v63  ;;  %v2387_v63 = vld [vmem:[%s3318_s6] ss:$0 sm:$0xff] }
 0x2a5   : > { %v1770_v56 = vld.sshfl [vmem:[#allocation1] sm:$0xff pattern:$0x73625140]  ;;  %v1859_v42 = vmax.f32 %v1857_v52, %v1858_v29  ;;  %v1836_v47 = vrot.slane %v1835_v41, 1  ;;  %v1844_v48 = vrot.slane %v1843_v39, 1 }
 0x2a6   : > { %1772 = vst [vmem:[#allocation1] ss:$4 sm:$0xff] %v1631_v1  ;;  %v1816_v7 = vsel %vm3216_vm14, %v1770_v56, 0.0  ;;  %v1780_v16 = vld.sshfl [vmem:[#allocation1 + $0x20] sm:$0xff pattern:$0x73625140] }
 0x2a7   : > { %1773 = vst [vmem:[#allocation1 + $0x1] ss:$4 sm:$0xff] %v1632_v45  ;;  %v1863_v3 = vmax.f32 %v1816_v7, %v1862_v2  ;;  %v1819_v20 = vsel %vm3198_vm13, %v1780_v16, 0.0  ;;  %v1828_v53 = vrot.slane %v1827_v40, 1  ;;  %v1860_v61 = vrot.slane %v1859_v42, 1 }
 0x2a8   : > { %1774 = vst [vmem:[#allocation1 + $0x2] ss:$4 sm:$0xff] %v1633_v50  ;;  %v1870_v32 = vsel %vm611_vm3, %v1819_v20, -inf  ;;  %v1837_v11 = vmax.f32 %v1835_v41, %v1836_v47  ;;  %v1845_v0 = vmax.f32 %v1843_v39, %v1844_v48 }
 0x2a9   : > { %1775 = vst [vmem:[#allocation1 + $0x3] ss:$4 sm:$0xff] %v1634_v55  ;;  %v1864_v22 = vrot.slane %v1863_v3, 4  ;;  %v1852_v55 = vrot.slane %v1851_v18, 1  ;;  %v1829_v2 = vmax.f32 %v1827_v40, %v1828_v53  ;;  %v1861_v5 = vmax.f32 %v1859_v42, %v1860_v61 }
 0x2aa   : > { %1785 = vst [vmem:[#allocation1 + $0x20] ss:$4 sm:$0xff] %v1642_v62  ;;  %v1887_v9 = vpack.c.bf16 %v1837_v11, %v1837_v11  ;;  %v1888_v16 = vpack.c.bf16 %v1845_v0, %v1845_v0 }
 0x2ab   : > { %1786 = vst [vmem:[#allocation1 + $0x21] ss:$4 sm:$0xff] %v1643_v4  ;;  %v1865_v36 = vmax.f32 %v1863_v3, %v1864_v22  ;;  %v1853_v4 = vmax.f32 %v1851_v18, %v1852_v55  ;;  %v1886_v54 = vpack.c.bf16 %v1829_v2, %v1829_v2  ;;  %v1890_v14 = vpack.c.bf16 %v1861_v5, %v1861_v5 }
 0x2ac   : > { %1787 = vst [vmem:[#allocation1 + $0x22] ss:$4 sm:$0xff] %v1644_v57  ;;  %v1923_v23 = vunpack.c.l.b16 %v1887_v9  ;;  %v1924_v20 = vunpack.c.l.b16 %v1888_v16 }
 0x2ad   : > { %v1866_v43 = vrot.slane %v1865_v36, 2  ;;  %v1889_v6 = vpack.c.bf16 %v1853_v4, %v1853_v4  ;;  %v1922_v21 = vunpack.c.l.b16 %v1886_v54 }
 0x2af   : > { %v1867_v49 = vmax.f32 %v1865_v36, %v1866_v43  ;;  %v1925_v22 = vunpack.c.l.b16 %v1889_v6 }
 0x2b0   : > { %v1779_v27 = vld.sshfl [vmem:[#allocation1] sm:$0xff pattern:$0x73625140] }
 0x2b1   : > { %1781 = vst [vmem:[#allocation1] ss:$4 sm:$0xff] %v1638_v10  ;;  %v1818_v34 = vsel %vm3216_vm14, %v1779_v27, 0.0  ;;  %v1868_v12 = vrot.slane %v1867_v49, 1 }
 0x2b2   : > { %1782 = vst [vmem:[#allocation1 + $0x1] ss:$4 sm:$0xff] %v1639_v26  ;;  %v1871_v37 = vmax.f32 %v1818_v34, %v1870_v32  ;;  %v1926_v26 = vunpack.c.l.b16 %v1890_v14 }
 0x2b3   : > { %1783 = vst [vmem:[#allocation1 + $0x2] ss:$4 sm:$0xff] %v1640_v28  ;;  %v1789_v46 = vld.sshfl [vmem:[#allocation1 + $0x20] sm:$0xff pattern:$0x73625140]  ;;  %v1869_v57 = vmax.f32 %v1867_v49, %v1868_v12  ;;  %v1930_v28 = vsel %vm943_vm10, %v1923_v23, %v1922_v21 }
 0x2b4   : > { %1784 = vst [vmem:[#allocation1 + $0x3] ss:$4 sm:$0xff] %v1641_v58  ;;  %v1872_v30 = vrot.slane %v1871_v37, 4  ;;  %v1821_v1 = vsel %vm3198_vm13, %v1789_v46, 0.0  ;;  %v1931_v52 = vsel %vm947_vm11, %v1924_v20, %v1930_v28 }
 0x2b5   : > { %v1878_v51 = vsel %vm611_vm3, %v1821_v1, -inf  ;;  %v1891_v19 = vpack.c.bf16 %v1869_v57, %v1869_v57  ;;  %v1932_v58 = vsel %vm951_vm12, %v1925_v22, %v1931_v52  ;;  %vm1939_vm3 = vcmask 1047559  }
 0x2b6   : > { %v1873_v15 = vmax.f32 %v1871_v37, %v1872_v30  ;;  %v1934_v27 = vsel %vm1933_vm15, %v1926_v26, %v1932_v58 }
 0x2b7   : > { %v1927_v8 = vunpack.c.l.b16 %v1891_v19 }
 0x2b8   : > { %v1874_v45 = vrot.slane %v1873_v15, 2 }
 0x2b9   : > { %v1936_v35 = vsel %vm1935_vm0, %v1927_v8, %v1934_v27 }
 0x2ba   : > { %v1875_v50 = vmax.f32 %v1873_v15, %v1874_v45 }
 0x2bb   : > { %v1788_v44 = vld.sshfl [vmem:[#allocation1] sm:$0xff pattern:$0x73625140] }
 0x2bc   : > { %v1820_v56 = vsel %vm3216_vm14, %v1788_v44, 0.0  ;;  %v1876_v31 = vrot.slane %v1875_v50, 1 }
 0x2bd   : > { %v1879_v62 = vmax.f32 %v1820_v56, %v1878_v51 }
 0x2be   : > { %v1877_v13 = vmax.f32 %v1875_v50, %v1876_v31 }
 0x2bf   : > { %v1880_v59 = vrot.slane %v1879_v62, 4 }
 0x2c0   : > { %v1892_v24 = vpack.c.bf16 %v1877_v13, %v1877_v13 }
 0x2c1   : > { %v1881_v7 = vmax.f32 %v1879_v62, %v1880_v59 }
 0x2c2   : > { %v1928_v60 = vunpack.c.l.b16 %v1892_v24 }
 0x2c3   : > { %v1882_v3 = vrot.slane %v1881_v7, 2 }
 0x2c4   : > { %v1938_v36 = vsel %vm1937_vm2, %v1928_v60, %v1936_v35 }
 0x2c5   : > { %v1883_v17 = vmax.f32 %v1881_v7, %v1882_v3 }
 0x2c7   : > { %v1884_v10 = vrot.slane %v1883_v17, 1 }
 0x2c9   : > { %v1885_v25 = vmax.f32 %v1883_v17, %v1884_v10 }
 0x2cb   : > { %v1893_v32 = vpack.c.bf16 %v1885_v25, %v1885_v25 }
 0x2cd   : > { %v1929_v34 = vunpack.c.l.b16 %v1893_v32 }
 0x2cf   : > { %v1940_v38 = vsel %vm1939_vm3, %v1929_v34, %v1938_v36 }
 0x2d0   : > { %v1941_v37 = vpack.c.b16 %v1940_v38, %v1940_v38 }
 0x2d2   : > { %1999 = vmatmul.bf16.vlgmr.msra.gmra.mxu3 %v1941_v37 }
 0x355   : > { %v2000_v33 = vpop.f32.mrf.mxu3 }
 0x356   : > { %v2001_v29 = vadd.f32 %v2387_v63, %v2000_v33 }
 0x358   : > { %2004 = vst [vmem:[%s274_s9] sm:$0xff] %v2001_v29 }
 0x359   : > { %2415 = shalt.err (!%p2412_p3)
}
 0x35a   : > { %2223 = dma.vmem_to_hbm [thread:$0]  (%p2532_p5), %s2019_s14, 128, %s2021_s15, %s2006_s16  }
 0x35d   : > { %v2002_v46 = vpop.f32.mrf.mxu3 }
 0x35e PF: > { %p2229_p4 = scmp.ge.s32.totalorder %s2450_s27, 2  ;;  %s2032_s18 = sand.u32 1, %s2438_s24  }
 0x35f   : > { %s2033_s28 = scalar_lea.sflag [#allocation3], %s2032_s18 }
 0x360   : > { %p2226_p7 = pnand %p2229_p4, %p2536_p6 }
 0x362   : > { %p2227_p8 = pneg %p2226_p7 }
 0x364   : > { %2433 = dma.done.wait (%p2227_p8), %s2033_s28, 128  }
 0x365   : > { %2435 = vsyncadd (%p2227_p8), %s2033_s28, 4294967168  ;;  %p17_p9 = scmp.ge.s32.totalorder %s2520_s30, 4   ;;  %s3326_s24 = smov %s2442_s25 }
 0x366   : > { %s3327_s25 = smov %s2446_s26  ;;  %s3328_s26 = smov %s2530_s10 }
 0x367   : > { %s3329_s27 = smov %s2520_s30  ;;  %19 = sbr.rel (!%p17_p9) target bundleno = 3 (0x3), region = 103 }
 0x36c   :  { %2039 = vsyncpa [#allocation3], 1 }
 0x36d   :  { %2041 = vsyncpa [#allocation3 + $0x1], 1 }

</bundles_post_ra>
